<compile_context>
chip_gen: v7x
topology: tpu7x:2x2x1
jax: 0.10.0
libtpu: 0.0.40
codegen_flags: <defaults>
</compile_context>

<pallas_src>
import jax
import jax.numpy as jnp
import numpy as np
from jax.experimental import pallas as pl
from jax.experimental.pallas import tpu as pltpu


def convlstm_kernel(x_ref, wx_ref, wh_ref, b_ref, out_ref, c_out_ref):
    seq_len = x_ref.shape[0]
    n = x_ref.shape[1]
    hd = wh_ref.shape[-1]

    # Hoist weights / bias out of the time loop (loaded once, reused every step).
    wx = [wx_ref[g] for g in range(4)]   # 4 x (Cin, Hd)  bf16
    wh = [wh_ref[g] for g in range(4)]   # 4 x (Hd,  Hd)  bf16
    b = [b_ref[g] for g in range(4)]     # 4 x (1,   Hd)  f32

    def gate(g, x_t, h_b):
        # x @ WxT + h @ WhT + b for one gate; MXU bf16 inputs, f32 accumulation.
        return (jnp.dot(x_t, wx[g], preferred_element_type=jnp.float32)
                + jnp.dot(h_b, wh[g], preferred_element_type=jnp.float32)
                + b[g])

    def step(t, carry):
        h, c = carry                                 # f32 state in vregs
        x_t = x_ref[t]                               # (Np, Cin) bf16, resident VMEM
        h_b = h.astype(jnp.bfloat16)
        i = jax.nn.sigmoid(gate(0, x_t, h_b))        # torch chunk order: i, f, g, o
        f = jax.nn.sigmoid(gate(1, x_t, h_b))
        g = jnp.tanh(gate(2, x_t, h_b))
        o = jax.nn.sigmoid(gate(3, x_t, h_b))
        c_new = f * c + i * g
        h_new = o * jnp.tanh(c_new)
        out_ref[t] = h_new                           # write into resident output
        return h_new, c_new

    h0 = jnp.zeros((n, hd), jnp.float32)             # states=None -> zero init
    c0 = jnp.zeros((n, hd), jnp.float32)
    _, c_fin = jax.lax.fori_loop(0, seq_len, step, (h0, c0), unroll=True)
    c_out_ref[...] = c_fin                           # single store, after the loop


def conv_lstm_forward(inputs, conv_w, conv_b, input_size, hidden_size):
    """inputs: (seq, batch, input_size); width = height = 1, kernel_size = 1."""
    seq_len, batch, _ = inputs.shape
    n = batch * 1 * 1                                # batch * height * width
    n_pad = ((n + 7) // 8) * 8                       # pad sublanes once, in the wrapper

    # conv weight (4*hidden, input_size + hidden, 1, 1) -> per-gate, channels-last.
    w2d = conv_w.reshape(4 * hidden_size, input_size + hidden_size).astype(jnp.float32)
    w_g = w2d.reshape(4, hidden_size, input_size + hidden_size)          # (gate, out, in)
    wx = jnp.transpose(w_g[:, :, :input_size], (0, 2, 1)).astype(jnp.bfloat16)  # (4, Cin, Hd)
    wh = jnp.transpose(w_g[:, :, input_size:], (0, 2, 1)).astype(jnp.bfloat16)  # (4, Hd, Hd)
    bias = conv_b.reshape(4, 1, hidden_size).astype(jnp.float32)                # (4, 1, Hd)

    x = inputs.astype(jnp.bfloat16)                                      # (seq, N, Cin)
    if n_pad != n:
        x = jnp.pad(x, ((0, 0), (0, n_pad - n), (0, 0)))

    out_h, out_c = pl.pallas_call(
        convlstm_kernel,
        out_shape=(
            jax.ShapeDtypeStruct((seq_len, n_pad, hidden_size), jnp.float32),
            jax.ShapeDtypeStruct((n_pad, hidden_size), jnp.float32),
        ),
        grid_spec=pltpu.PrefetchScalarGridSpec(
            num_scalar_prefetch=0,
            grid=(1,),  # whole sequence resident; recurrence loops inside the kernel
            in_specs=[
                pl.BlockSpec((seq_len, n_pad, input_size), lambda i: (0, 0, 0)),
                pl.BlockSpec((4, input_size, hidden_size), lambda i: (0, 0, 0)),
                pl.BlockSpec((4, hidden_size, hidden_size), lambda i: (0, 0, 0)),
                pl.BlockSpec((4, 1, hidden_size), lambda i: (0, 0, 0)),
            ],
            out_specs=(
                pl.BlockSpec((seq_len, n_pad, hidden_size), lambda i: (0, 0, 0)),
                pl.BlockSpec((n_pad, hidden_size), lambda i: (0, 0)),
            ),
        ),
        compiler_params=pltpu.CompilerParams(
            dimension_semantics=("arbitrary",)),  # time recurrence is sequential
    )(x, wx, wh, bias)

    out_h = out_h[:, :n]                                   # drop sublane padding
    out_c = out_c[:n]

    # back to PyTorch output layout: (seq, batch, hidden, height, width)
    outputs = out_h.reshape(seq_len, batch, hidden_size, 1, 1)
    h_final = out_h[-1].reshape(batch, hidden_size, 1, 1)
    c_final = out_c.reshape(batch, hidden_size, 1, 1)
    return outputs, (h_final, c_final)


def _reference(inputs, conv_w, conv_b, input_size, hidden_size):
    """Pure-JAX reference mirroring the PyTorch loop (same bf16 matmul operands,
    f32 accumulation / state, so it tracks the kernel's precision)."""
    seq_len, batch, _ = inputs.shape
    w2d = conv_w.reshape(4 * hidden_size, input_size + hidden_size).astype(jnp.float32)
    w_g = w2d.reshape(4, hidden_size, input_size + hidden_size)
    wx = jnp.transpose(w_g[:, :, :input_size], (0, 2, 1)).astype(jnp.bfloat16)
    wh = jnp.transpose(w_g[:, :, input_size:], (0, 2, 1)).astype(jnp.bfloat16)
    bias = conv_b.reshape(4, 1, hidden_size).astype(jnp.float32)
    x = inputs.astype(jnp.bfloat16)

    h = jnp.zeros((batch, hidden_size), jnp.float32)
    c = jnp.zeros((batch, hidden_size), jnp.float32)
    outs = []
    for t in range(seq_len):
        hb = h.astype(jnp.bfloat16)
        gs = [jnp.dot(x[t], wx[g], preferred_element_type=jnp.float32)
              + jnp.dot(hb, wh[g], preferred_element_type=jnp.float32)
              + bias[g] for g in range(4)]
        i = jax.nn.sigmoid(gs[0])
        f = jax.nn.sigmoid(gs[1])
        g_ = jnp.tanh(gs[2])
        o = jax.nn.sigmoid(gs[3])
        c = f * c + i * g_
        h = o * jnp.tanh(c)
        outs.append(h)
    return jnp.stack(outs).reshape(seq_len, batch, hidden_size, 1, 1), (h, c)


if __name__ == "__main__":
    # Module config (defaults: width=height=1, kernel_size=1, aux_weights=False)
    seq_len, batch, input_size, hidden_size = 8, 2, 4, 32

    key = jax.random.PRNGKey(0)
    k_x, k_w, k_b = jax.random.split(key, 3)

    # inputs: (seq, batch, input_size) as the module's forward expects (pre-reshape)
    x = jax.random.normal(k_x, (seq_len, batch, input_size), jnp.float32)

    # Conv2d(in=input_size+hidden, out=4*hidden, k=1); xavier_uniform weight,
    # PyTorch-default uniform bias (deterministic in-script init).
    fan_in = (input_size + hidden_size) * 1 * 1
    fan_out = (4 * hidden_size) * 1 * 1
    xav = float(np.sqrt(6.0 / (fan_in + fan_out)))
    conv_w = jax.random.uniform(
        k_w, (4 * hidden_size, input_size + hidden_size, 1, 1),
        jnp.float32, minval=-xav, maxval=xav)
    b_bound = float(1.0 / np.sqrt(fan_in))
    conv_b = jax.random.uniform(
        k_b, (4 * hidden_size,), jnp.float32, minval=-b_bound, maxval=b_bound)

    outputs, (h_fin, c_fin) = conv_lstm_forward(x, conv_w, conv_b,
                                                input_size, hidden_size)
    jax.block_until_ready((outputs, h_fin, c_fin))

    # correctness check vs. pure-JAX reference of the PyTorch loop
    ref_out, (ref_h, ref_c) = _reference(x, conv_w, conv_b, input_size, hidden_size)
    np.testing.assert_allclose(np.asarray(outputs), np.asarray(ref_out),
                               rtol=1e-4, atol=1e-4)
    np.testing.assert_allclose(np.asarray(h_fin.reshape(batch, hidden_size)),
                               np.asarray(ref_h), rtol=1e-4, atol=1e-4)
    np.testing.assert_allclose(np.asarray(c_fin.reshape(batch, hidden_size)),
                               np.asarray(ref_c), rtol=1e-4, atol=1e-4)

    print("KERNEL_OK")
</pallas_src>

<mosaic_0001>
module attributes {stable_mosaic.version = 11 : i64} {
  func.func @convlstm_kernel(%arg0: i32, %arg1: memref<8x8x4xbf16, #tpu.memory_space<vmem>>, %arg2: memref<4x4x32xbf16, #tpu.memory_space<vmem>>, %arg3: memref<4x32x32xbf16, #tpu.memory_space<vmem>>, %arg4: memref<4x1x32xf32, #tpu.memory_space<vmem>>, %arg5: memref<8x8x32xf32, #tpu.memory_space<vmem>>, %arg6: memref<8x32xf32, #tpu.memory_space<vmem>>) attributes {dimension_semantics = [#tpu.dimension_semantics<arbitrary>], iteration_bounds = array<i64: 1>, scalar_prefetch = 0 : i64, scratch_operands = 0 : i64, tpu.core_type = #tpu.core_type<tc>, window_params = [{pipeline_mode = #tpu.pipeline_mode<synchronous>, transform_indices = @transform_0, window_bounds = array<i64: 8, 8, 4>}, {pipeline_mode = #tpu.pipeline_mode<synchronous>, transform_indices = @transform_1, window_bounds = array<i64: 4, 4, 32>}, {pipeline_mode = #tpu.pipeline_mode<synchronous>, transform_indices = @transform_2, window_bounds = array<i64: 4, 32, 32>}, {pipeline_mode = #tpu.pipeline_mode<synchronous>, transform_indices = @transform_3, window_bounds = array<i64: 4, 1, 32>}, {pipeline_mode = #tpu.pipeline_mode<synchronous>, transform_indices = @transform_4, window_bounds = array<i64: 8, 8, 32>}, {pipeline_mode = #tpu.pipeline_mode<synchronous>, transform_indices = @transform_5, window_bounds = array<i64: 8, 32>}]} {
    %c0 = arith.constant 0 : index
    %c0_0 = arith.constant 0 : index
    %c0_1 = arith.constant 0 : index
    %0 = vector.load %arg2[%c0, %c0_0, %c0_1] : memref<4x4x32xbf16, #tpu.memory_space<vmem>>, vector<1x4x32xbf16>
    %1 = vector.shape_cast %0 : vector<1x4x32xbf16> to vector<4x32xbf16>
    %c1 = arith.constant 1 : index
    %c0_2 = arith.constant 0 : index
    %c0_3 = arith.constant 0 : index
    %2 = vector.load %arg2[%c1, %c0_2, %c0_3] : memref<4x4x32xbf16, #tpu.memory_space<vmem>>, vector<1x4x32xbf16>
    %3 = vector.shape_cast %2 : vector<1x4x32xbf16> to vector<4x32xbf16>
    %c2 = arith.constant 2 : index
    %c0_4 = arith.constant 0 : index
    %c0_5 = arith.constant 0 : index
    %4 = vector.load %arg2[%c2, %c0_4, %c0_5] : memref<4x4x32xbf16, #tpu.memory_space<vmem>>, vector<1x4x32xbf16>
    %5 = vector.shape_cast %4 : vector<1x4x32xbf16> to vector<4x32xbf16>
    %c3 = arith.constant 3 : index
    %c0_6 = arith.constant 0 : index
    %c0_7 = arith.constant 0 : index
    %6 = vector.load %arg2[%c3, %c0_6, %c0_7] : memref<4x4x32xbf16, #tpu.memory_space<vmem>>, vector<1x4x32xbf16>
    %7 = vector.shape_cast %6 : vector<1x4x32xbf16> to vector<4x32xbf16>
    %c0_8 = arith.constant 0 : index
    %c0_9 = arith.constant 0 : index
    %c0_10 = arith.constant 0 : index
    %8 = vector.load %arg3[%c0_8, %c0_9, %c0_10] : memref<4x32x32xbf16, #tpu.memory_space<vmem>>, vector<1x32x32xbf16>
    %9 = vector.shape_cast %8 : vector<1x32x32xbf16> to vector<32x32xbf16>
    %c1_11 = arith.constant 1 : index
    %c0_12 = arith.constant 0 : index
    %c0_13 = arith.constant 0 : index
    %10 = vector.load %arg3[%c1_11, %c0_12, %c0_13] : memref<4x32x32xbf16, #tpu.memory_space<vmem>>, vector<1x32x32xbf16>
    %11 = vector.shape_cast %10 : vector<1x32x32xbf16> to vector<32x32xbf16>
    %c2_14 = arith.constant 2 : index
    %c0_15 = arith.constant 0 : index
    %c0_16 = arith.constant 0 : index
    %12 = vector.load %arg3[%c2_14, %c0_15, %c0_16] : memref<4x32x32xbf16, #tpu.memory_space<vmem>>, vector<1x32x32xbf16>
    %13 = vector.shape_cast %12 : vector<1x32x32xbf16> to vector<32x32xbf16>
    %c3_17 = arith.constant 3 : index
    %c0_18 = arith.constant 0 : index
    %c0_19 = arith.constant 0 : index
    %14 = vector.load %arg3[%c3_17, %c0_18, %c0_19] : memref<4x32x32xbf16, #tpu.memory_space<vmem>>, vector<1x32x32xbf16>
    %15 = vector.shape_cast %14 : vector<1x32x32xbf16> to vector<32x32xbf16>
    %c0_20 = arith.constant 0 : index
    %c0_21 = arith.constant 0 : index
    %c0_22 = arith.constant 0 : index
    %16 = vector.load %arg4[%c0_20, %c0_21, %c0_22] : memref<4x1x32xf32, #tpu.memory_space<vmem>>, vector<1x1x32xf32>
    %17 = vector.shape_cast %16 : vector<1x1x32xf32> to vector<1x32xf32>
    %c1_23 = arith.constant 1 : index
    %c0_24 = arith.constant 0 : index
    %c0_25 = arith.constant 0 : index
    %18 = vector.load %arg4[%c1_23, %c0_24, %c0_25] : memref<4x1x32xf32, #tpu.memory_space<vmem>>, vector<1x1x32xf32>
    %19 = vector.shape_cast %18 : vector<1x1x32xf32> to vector<1x32xf32>
    %c2_26 = arith.constant 2 : index
    %c0_27 = arith.constant 0 : index
    %c0_28 = arith.constant 0 : index
    %20 = vector.load %arg4[%c2_26, %c0_27, %c0_28] : memref<4x1x32xf32, #tpu.memory_space<vmem>>, vector<1x1x32xf32>
    %21 = vector.shape_cast %20 : vector<1x1x32xf32> to vector<1x32xf32>
    %c3_29 = arith.constant 3 : index
    %c0_30 = arith.constant 0 : index
    %c0_31 = arith.constant 0 : index
    %22 = vector.load %arg4[%c3_29, %c0_30, %c0_31] : memref<4x1x32xf32, #tpu.memory_space<vmem>>, vector<1x1x32xf32>
    %23 = vector.shape_cast %22 : vector<1x1x32xf32> to vector<1x32xf32>
    %cst = arith.constant 0.000000e+00 : f32
    %24 = vector.broadcast %cst : f32 to vector<8x32xf32>
    %cst_32 = arith.constant 0.000000e+00 : f32
    %25 = vector.broadcast %cst_32 : f32 to vector<8x32xf32>
    %c0_i32 = arith.constant 0 : i32
    %26 = arith.index_cast %c0_i32 : i32 to index
    %c0_33 = arith.constant 0 : index
    %c0_34 = arith.constant 0 : index
    %27 = vector.load %arg1[%26, %c0_33, %c0_34] : memref<8x8x4xbf16, #tpu.memory_space<vmem>>, vector<1x8x4xbf16>
    %28 = vector.shape_cast %27 : vector<1x8x4xbf16> to vector<8x4xbf16>
    %29 = arith.truncf %24 : vector<8x32xf32> to vector<8x32xbf16>
    %cst_35 = arith.constant dense<0.000000e+00> : vector<8x32xf32>
    %30 = tpu.matmul %28, %1, %cst_35 {dimension_numbers = #tpu.dot_dimension_numbers<[1], [0], [0], [1], [0, 0, 1, 1], [], []>} : vector<8x4xbf16>, vector<4x32xbf16>, vector<8x32xf32> -> vector<8x32xf32>
    %cst_36 = arith.constant dense<0.000000e+00> : vector<8x32xf32>
    %31 = tpu.matmul %29, %9, %cst_36 {dimension_numbers = #tpu.dot_dimension_numbers<[1], [0], [0], [1], [0, 0, 1, 1], [], []>} : vector<8x32xbf16>, vector<32x32xbf16>, vector<8x32xf32> -> vector<8x32xf32>
    %32 = arith.addf %30, %31 : vector<8x32xf32>
    %33 = vector.broadcast %17 : vector<1x32xf32> to vector<8x32xf32>
    %34 = arith.addf %32, %33 : vector<8x32xf32>
    %35 = arith.negf %34 : vector<8x32xf32>
    %36 = math.exp %35 : vector<8x32xf32>
    %cst_37 = arith.constant 1.000000e+00 : f32
    %37 = vector.broadcast %cst_37 : f32 to vector<8x32xf32>
    %38 = arith.addf %37, %36 : vector<8x32xf32>
    %39 = arith.divf %37, %38 : vector<8x32xf32>
    %cst_38 = arith.constant dense<0.000000e+00> : vector<8x32xf32>
    %40 = tpu.matmul %28, %3, %cst_38 {dimension_numbers = #tpu.dot_dimension_numbers<[1], [0], [0], [1], [0, 0, 1, 1], [], []>} : vector<8x4xbf16>, vector<4x32xbf16>, vector<8x32xf32> -> vector<8x32xf32>
    %cst_39 = arith.constant dense<0.000000e+00> : vector<8x32xf32>
    %41 = tpu.matmul %29, %11, %cst_39 {dimension_numbers = #tpu.dot_dimension_numbers<[1], [0], [0], [1], [0, 0, 1, 1], [], []>} : vector<8x32xbf16>, vector<32x32xbf16>, vector<8x32xf32> -> vector<8x32xf32>
    %42 = arith.addf %40, %41 : vector<8x32xf32>
    %43 = vector.broadcast %19 : vector<1x32xf32> to vector<8x32xf32>
    %44 = arith.addf %42, %43 : vector<8x32xf32>
    %45 = arith.negf %44 : vector<8x32xf32>
    %46 = math.exp %45 : vector<8x32xf32>
    %cst_40 = arith.constant 1.000000e+00 : f32
    %47 = vector.broadcast %cst_40 : f32 to vector<8x32xf32>
    %48 = arith.addf %47, %46 : vector<8x32xf32>
    %49 = arith.divf %47, %48 : vector<8x32xf32>
    %cst_41 = arith.constant dense<0.000000e+00> : vector<8x32xf32>
    %50 = tpu.matmul %28, %5, %cst_41 {dimension_numbers = #tpu.dot_dimension_numbers<[1], [0], [0], [1], [0, 0, 1, 1], [], []>} : vector<8x4xbf16>, vector<4x32xbf16>, vector<8x32xf32> -> vector<8x32xf32>
    %cst_42 = arith.constant dense<0.000000e+00> : vector<8x32xf32>
    %51 = tpu.matmul %29, %13, %cst_42 {dimension_numbers = #tpu.dot_dimension_numbers<[1], [0], [0], [1], [0, 0, 1, 1], [], []>} : vector<8x32xbf16>, vector<32x32xbf16>, vector<8x32xf32> -> vector<8x32xf32>
    %52 = arith.addf %50, %51 : vector<8x32xf32>
    %53 = vector.broadcast %21 : vector<1x32xf32> to vector<8x32xf32>
    %54 = arith.addf %52, %53 : vector<8x32xf32>
    %55 = math.tanh %54 : vector<8x32xf32>
    %cst_43 = arith.constant dense<0.000000e+00> : vector<8x32xf32>
    %56 = tpu.matmul %28, %7, %cst_43 {dimension_numbers = #tpu.dot_dimension_numbers<[1], [0], [0], [1], [0, 0, 1, 1], [], []>} : vector<8x4xbf16>, vector<4x32xbf16>, vector<8x32xf32> -> vector<8x32xf32>
    %cst_44 = arith.constant dense<0.000000e+00> : vector<8x32xf32>
    %57 = tpu.matmul %29, %15, %cst_44 {dimension_numbers = #tpu.dot_dimension_numbers<[1], [0], [0], [1], [0, 0, 1, 1], [], []>} : vector<8x32xbf16>, vector<32x32xbf16>, vector<8x32xf32> -> vector<8x32xf32>
    %58 = arith.addf %56, %57 : vector<8x32xf32>
    %59 = vector.broadcast %23 : vector<1x32xf32> to vector<8x32xf32>
    %60 = arith.addf %58, %59 : vector<8x32xf32>
    %61 = arith.negf %60 : vector<8x32xf32>
    %62 = math.exp %61 : vector<8x32xf32>
    %cst_45 = arith.constant 1.000000e+00 : f32
    %63 = vector.broadcast %cst_45 : f32 to vector<8x32xf32>
    %64 = arith.addf %63, %62 : vector<8x32xf32>
    %65 = arith.divf %63, %64 : vector<8x32xf32>
    %66 = arith.mulf %49, %25 : vector<8x32xf32>
    %67 = arith.mulf %39, %55 : vector<8x32xf32>
    %68 = arith.addf %66, %67 : vector<8x32xf32>
    %69 = math.tanh %68 : vector<8x32xf32>
    %70 = arith.mulf %65, %69 : vector<8x32xf32>
    %71 = arith.index_cast %c0_i32 : i32 to index
    %c0_46 = arith.constant 0 : index
    %c0_47 = arith.constant 0 : index
    %72 = vector.load %arg5[%71, %c0_46, %c0_47] : memref<8x8x32xf32, #tpu.memory_space<vmem>>, vector<1x8x32xf32>
    %73 = vector.shape_cast %72 : vector<1x8x32xf32> to vector<8x32xf32>
    %74 = vector.shape_cast %70 : vector<8x32xf32> to vector<1x8x32xf32>
    tpu.vector_store %arg5[%71, %c0_46, %c0_47], %74 {strides = array<i32>} : memref<8x8x32xf32, #tpu.memory_space<vmem>>, vector<1x8x32xf32>,
    %c1_i32 = arith.constant 1 : i32
    %75 = arith.index_cast %c1_i32 : i32 to index
    %c0_48 = arith.constant 0 : index
    %c0_49 = arith.constant 0 : index
    %76 = vector.load %arg1[%75, %c0_48, %c0_49] : memref<8x8x4xbf16, #tpu.memory_space<vmem>>, vector<1x8x4xbf16>
    %77 = vector.shape_cast %76 : vector<1x8x4xbf16> to vector<8x4xbf16>
    %78 = arith.truncf %70 : vector<8x32xf32> to vector<8x32xbf16>
    %cst_50 = arith.constant dense<0.000000e+00> : vector<8x32xf32>
    %79 = tpu.matmul %77, %1, %cst_50 {dimension_numbers = #tpu.dot_dimension_numbers<[1], [0], [0], [1], [0, 0, 1, 1], [], []>} : vector<8x4xbf16>, vector<4x32xbf16>, vector<8x32xf32> -> vector<8x32xf32>
    %cst_51 = arith.constant dense<0.000000e+00> : vector<8x32xf32>
    %80 = tpu.matmul %78, %9, %cst_51 {dimension_numbers = #tpu.dot_dimension_numbers<[1], [0], [0], [1], [0, 0, 1, 1], [], []>} : vector<8x32xbf16>, vector<32x32xbf16>, vector<8x32xf32> -> vector<8x32xf32>
    %81 = arith.addf %79, %80 : vector<8x32xf32>
    %82 = vector.broadcast %17 : vector<1x32xf32> to vector<8x32xf32>
    %83 = arith.addf %81, %82 : vector<8x32xf32>
    %84 = arith.negf %83 : vector<8x32xf32>
    %85 = math.exp %84 : vector<8x32xf32>
    %cst_52 = arith.constant 1.000000e+00 : f32
    %86 = vector.broadcast %cst_52 : f32 to vector<8x32xf32>
    %87 = arith.addf %86, %85 : vector<8x32xf32>
    %88 = arith.divf %86, %87 : vector<8x32xf32>
    %cst_53 = arith.constant dense<0.000000e+00> : vector<8x32xf32>
    %89 = tpu.matmul %77, %3, %cst_53 {dimension_numbers = #tpu.dot_dimension_numbers<[1], [0], [0], [1], [0, 0, 1, 1], [], []>} : vector<8x4xbf16>, vector<4x32xbf16>, vector<8x32xf32> -> vector<8x32xf32>
    %cst_54 = arith.constant dense<0.000000e+00> : vector<8x32xf32>
    %90 = tpu.matmul %78, %11, %cst_54 {dimension_numbers = #tpu.dot_dimension_numbers<[1], [0], [0], [1], [0, 0, 1, 1], [], []>} : vector<8x32xbf16>, vector<32x32xbf16>, vector<8x32xf32> -> vector<8x32xf32>
    %91 = arith.addf %89, %90 : vector<8x32xf32>
    %92 = vector.broadcast %19 : vector<1x32xf32> to vector<8x32xf32>
    %93 = arith.addf %91, %92 : vector<8x32xf32>
    %94 = arith.negf %93 : vector<8x32xf32>
    %95 = math.exp %94 : vector<8x32xf32>
    %cst_55 = arith.constant 1.000000e+00 : f32
    %96 = vector.broadcast %cst_55 : f32 to vector<8x32xf32>
    %97 = arith.addf %96, %95 : vector<8x32xf32>
    %98 = arith.divf %96, %97 : vector<8x32xf32>
    %cst_56 = arith.constant dense<0.000000e+00> : vector<8x32xf32>
    %99 = tpu.matmul %77, %5, %cst_56 {dimension_numbers = #tpu.dot_dimension_numbers<[1], [0], [0], [1], [0, 0, 1, 1], [], []>} : vector<8x4xbf16>, vector<4x32xbf16>, vector<8x32xf32> -> vector<8x32xf32>
    %cst_57 = arith.constant dense<0.000000e+00> : vector<8x32xf32>
    %100 = tpu.matmul %78, %13, %cst_57 {dimension_numbers = #tpu.dot_dimension_numbers<[1], [0], [0], [1], [0, 0, 1, 1], [], []>} : vector<8x32xbf16>, vector<32x32xbf16>, vector<8x32xf32> -> vector<8x32xf32>
    %101 = arith.addf %99, %100 : vector<8x32xf32>
    %102 = vector.broadcast %21 : vector<1x32xf32> to vector<8x32xf32>
    %103 = arith.addf %101, %102 : vector<8x32xf32>
    %104 = math.tanh %103 : vector<8x32xf32>
    %cst_58 = arith.constant dense<0.000000e+00> : vector<8x32xf32>
    %105 = tpu.matmul %77, %7, %cst_58 {dimension_numbers = #tpu.dot_dimension_numbers<[1], [0], [0], [1], [0, 0, 1, 1], [], []>} : vector<8x4xbf16>, vector<4x32xbf16>, vector<8x32xf32> -> vector<8x32xf32>
    %cst_59 = arith.constant dense<0.000000e+00> : vector<8x32xf32>
    %106 = tpu.matmul %78, %15, %cst_59 {dimension_numbers = #tpu.dot_dimension_numbers<[1], [0], [0], [1], [0, 0, 1, 1], [], []>} : vector<8x32xbf16>, vector<32x32xbf16>, vector<8x32xf32> -> vector<8x32xf32>
    %107 = arith.addf %105, %106 : vector<8x32xf32>
    %108 = vector.broadcast %23 : vector<1x32xf32> to vector<8x32xf32>
    %109 = arith.addf %107, %108 : vector<8x32xf32>
    %110 = arith.negf %109 : vector<8x32xf32>
    %111 = math.exp %110 : vector<8x32xf32>
    %cst_60 = arith.constant 1.000000e+00 : f32
    %112 = vector.broadcast %cst_60 : f32 to vector<8x32xf32>
    %113 = arith.addf %112, %111 : vector<8x32xf32>
    %114 = arith.divf %112, %113 : vector<8x32xf32>
    %115 = arith.mulf %98, %68 : vector<8x32xf32>
    %116 = arith.mulf %88, %104 : vector<8x32xf32>
    %117 = arith.addf %115, %116 : vector<8x32xf32>
    %118 = math.tanh %117 : vector<8x32xf32>
    %119 = arith.mulf %114, %118 : vector<8x32xf32>
    %120 = arith.index_cast %c1_i32 : i32 to index
    %c0_61 = arith.constant 0 : index
    %c0_62 = arith.constant 0 : index
    %121 = vector.load %arg5[%120, %c0_61, %c0_62] : memref<8x8x32xf32, #tpu.memory_space<vmem>>, vector<1x8x32xf32>
    %122 = vector.shape_cast %121 : vector<1x8x32xf32> to vector<8x32xf32>
    %123 = vector.shape_cast %119 : vector<8x32xf32> to vector<1x8x32xf32>
    tpu.vector_store %arg5[%120, %c0_61, %c0_62], %123 {strides = array<i32>} : memref<8x8x32xf32, #tpu.memory_space<vmem>>, vector<1x8x32xf32>,
    %c2_i32 = arith.constant 2 : i32
    %124 = arith.index_cast %c2_i32 : i32 to index
    %c0_63 = arith.constant 0 : index
    %c0_64 = arith.constant 0 : index
    %125 = vector.load %arg1[%124, %c0_63, %c0_64] : memref<8x8x4xbf16, #tpu.memory_space<vmem>>, vector<1x8x4xbf16>
    %126 = vector.shape_cast %125 : vector<1x8x4xbf16> to vector<8x4xbf16>
    %127 = arith.truncf %119 : vector<8x32xf32> to vector<8x32xbf16>
    %cst_65 = arith.constant dense<0.000000e+00> : vector<8x32xf32>
    %128 = tpu.matmul %126, %1, %cst_65 {dimension_numbers = #tpu.dot_dimension_numbers<[1], [0], [0], [1], [0, 0, 1, 1], [], []>} : vector<8x4xbf16>, vector<4x32xbf16>, vector<8x32xf32> -> vector<8x32xf32>
    %cst_66 = arith.constant dense<0.000000e+00> : vector<8x32xf32>
    %129 = tpu.matmul %127, %9, %cst_66 {dimension_numbers = #tpu.dot_dimension_numbers<[1], [0], [0], [1], [0, 0, 1, 1], [], []>} : vector<8x32xbf16>, vector<32x32xbf16>, vector<8x32xf32> -> vector<8x32xf32>
    %130 = arith.addf %128, %129 : vector<8x32xf32>
    %131 = vector.broadcast %17 : vector<1x32xf32> to vector<8x32xf32>
    %132 = arith.addf %130, %131 : vector<8x32xf32>
    %133 = arith.negf %132 : vector<8x32xf32>
    %134 = math.exp %133 : vector<8x32xf32>
    %cst_67 = arith.constant 1.000000e+00 : f32
    %135 = vector.broadcast %cst_67 : f32 to vector<8x32xf32>
    %136 = arith.addf %135, %134 : vector<8x32xf32>
    %137 = arith.divf %135, %136 : vector<8x32xf32>
    %cst_68 = arith.constant dense<0.000000e+00> : vector<8x32xf32>
    %138 = tpu.matmul %126, %3, %cst_68 {dimension_numbers = #tpu.dot_dimension_numbers<[1], [0], [0], [1], [0, 0, 1, 1], [], []>} : vector<8x4xbf16>, vector<4x32xbf16>, vector<8x32xf32> -> vector<8x32xf32>
    %cst_69 = arith.constant dense<0.000000e+00> : vector<8x32xf32>
    %139 = tpu.matmul %127, %11, %cst_69 {dimension_numbers = #tpu.dot_dimension_numbers<[1], [0], [0], [1], [0, 0, 1, 1], [], []>} : vector<8x32xbf16>, vector<32x32xbf16>, vector<8x32xf32> -> vector<8x32xf32>
    %140 = arith.addf %138, %139 : vector<8x32xf32>
    %141 = vector.broadcast %19 : vector<1x32xf32> to vector<8x32xf32>
    %142 = arith.addf %140, %141 : vector<8x32xf32>
    %143 = arith.negf %142 : vector<8x32xf32>
    %144 = math.exp %143 : vector<8x32xf32>
    %cst_70 = arith.constant 1.000000e+00 : f32
    %145 = vector.broadcast %cst_70 : f32 to vector<8x32xf32>
    %146 = arith.addf %145, %144 : vector<8x32xf32>
    %147 = arith.divf %145, %146 : vector<8x32xf32>
    %cst_71 = arith.constant dense<0.000000e+00> : vector<8x32xf32>
    %148 = tpu.matmul %126, %5, %cst_71 {dimension_numbers = #tpu.dot_dimension_numbers<[1], [0], [0], [1], [0, 0, 1, 1], [], []>} : vector<8x4xbf16>, vector<4x32xbf16>, vector<8x32xf32> -> vector<8x32xf32>
    %cst_72 = arith.constant dense<0.000000e+00> : vector<8x32xf32>
    %149 = tpu.matmul %127, %13, %cst_72 {dimension_numbers = #tpu.dot_dimension_numbers<[1], [0], [0], [1], [0, 0, 1, 1], [], []>} : vector<8x32xbf16>, vector<32x32xbf16>, vector<8x32xf32> -> vector<8x32xf32>
    %150 = arith.addf %148, %149 : vector<8x32xf32>
    %151 = vector.broadcast %21 : vector<1x32xf32> to vector<8x32xf32>
    %152 = arith.addf %150, %151 : vector<8x32xf32>
    %153 = math.tanh %152 : vector<8x32xf32>
    %cst_73 = arith.constant dense<0.000000e+00> : vector<8x32xf32>
    %154 = tpu.matmul %126, %7, %cst_73 {dimension_numbers = #tpu.dot_dimension_numbers<[1], [0], [0], [1], [0, 0, 1, 1], [], []>} : vector<8x4xbf16>, vector<4x32xbf16>, vector<8x32xf32> -> vector<8x32xf32>
    %cst_74 = arith.constant dense<0.000000e+00> : vector<8x32xf32>
    %155 = tpu.matmul %127, %15, %cst_74 {dimension_numbers = #tpu.dot_dimension_numbers<[1], [0], [0], [1], [0, 0, 1, 1], [], []>} : vector<8x32xbf16>, vector<32x32xbf16>, vector<8x32xf32> -> vector<8x32xf32>
    %156 = arith.addf %154, %155 : vector<8x32xf32>
    %157 = vector.broadcast %23 : vector<1x32xf32> to vector<8x32xf32>
    %158 = arith.addf %156, %157 : vector<8x32xf32>
    %159 = arith.negf %158 : vector<8x32xf32>
    %160 = math.exp %159 : vector<8x32xf32>
    %cst_75 = arith.constant 1.000000e+00 : f32
    %161 = vector.broadcast %cst_75 : f32 to vector<8x32xf32>
    %162 = arith.addf %161, %160 : vector<8x32xf32>
    %163 = arith.divf %161, %162 : vector<8x32xf32>
    %164 = arith.mulf %147, %117 : vector<8x32xf32>
    %165 = arith.mulf %137, %153 : vector<8x32xf32>
    %166 = arith.addf %164, %165 : vector<8x32xf32>
    %167 = math.tanh %166 : vector<8x32xf32>
    %168 = arith.mulf %163, %167 : vector<8x32xf32>
    %169 = arith.index_cast %c2_i32 : i32 to index
    %c0_76 = arith.constant 0 : index
    %c0_77 = arith.constant 0 : index
    %170 = vector.load %arg5[%169, %c0_76, %c0_77] : memref<8x8x32xf32, #tpu.memory_space<vmem>>, vector<1x8x32xf32>
    %171 = vector.shape_cast %170 : vector<1x8x32xf32> to vector<8x32xf32>
    %172 = vector.shape_cast %168 : vector<8x32xf32> to vector<1x8x32xf32>
    tpu.vector_store %arg5[%169, %c0_76, %c0_77], %172 {strides = array<i32>} : memref<8x8x32xf32, #tpu.memory_space<vmem>>, vector<1x8x32xf32>,
    %c3_i32 = arith.constant 3 : i32
    %173 = arith.index_cast %c3_i32 : i32 to index
    %c0_78 = arith.constant 0 : index
    %c0_79 = arith.constant 0 : index
    %174 = vector.load %arg1[%173, %c0_78, %c0_79] : memref<8x8x4xbf16, #tpu.memory_space<vmem>>, vector<1x8x4xbf16>
    %175 = vector.shape_cast %174 : vector<1x8x4xbf16> to vector<8x4xbf16>
    %176 = arith.truncf %168 : vector<8x32xf32> to vector<8x32xbf16>
    %cst_80 = arith.constant dense<0.000000e+00> : vector<8x32xf32>
    %177 = tpu.matmul %175, %1, %cst_80 {dimension_numbers = #tpu.dot_dimension_numbers<[1], [0], [0], [1], [0, 0, 1, 1], [], []>} : vector<8x4xbf16>, vector<4x32xbf16>, vector<8x32xf32> -> vector<8x32xf32>
    %cst_81 = arith.constant dense<0.000000e+00> : vector<8x32xf32>
    %178 = tpu.matmul %176, %9, %cst_81 {dimension_numbers = #tpu.dot_dimension_numbers<[1], [0], [0], [1], [0, 0, 1, 1], [], []>} : vector<8x32xbf16>, vector<32x32xbf16>, vector<8x32xf32> -> vector<8x32xf32>
    %179 = arith.addf %177, %178 : vector<8x32xf32>
    %180 = vector.broadcast %17 : vector<1x32xf32> to vector<8x32xf32>
    %181 = arith.addf %179, %180 : vector<8x32xf32>
    %182 = arith.negf %181 : vector<8x32xf32>
    %183 = math.exp %182 : vector<8x32xf32>
    %cst_82 = arith.constant 1.000000e+00 : f32
    %184 = vector.broadcast %cst_82 : f32 to vector<8x32xf32>
    %185 = arith.addf %184, %183 : vector<8x32xf32>
    %186 = arith.divf %184, %185 : vector<8x32xf32>
    %cst_83 = arith.constant dense<0.000000e+00> : vector<8x32xf32>
    %187 = tpu.matmul %175, %3, %cst_83 {dimension_numbers = #tpu.dot_dimension_numbers<[1], [0], [0], [1], [0, 0, 1, 1], [], []>} : vector<8x4xbf16>, vector<4x32xbf16>, vector<8x32xf32> -> vector<8x32xf32>
    %cst_84 = arith.constant dense<0.000000e+00> : vector<8x32xf32>
    %188 = tpu.matmul %176, %11, %cst_84 {dimension_numbers = #tpu.dot_dimension_numbers<[1], [0], [0], [1], [0, 0, 1, 1], [], []>} : vector<8x32xbf16>, vector<32x32xbf16>, vector<8x32xf32> -> vector<8x32xf32>
    %189 = arith.addf %187, %188 : vector<8x32xf32>
    %190 = vector.broadcast %19 : vector<1x32xf32> to vector<8x32xf32>
    %191 = arith.addf %189, %190 : vector<8x32xf32>
    %192 = arith.negf %191 : vector<8x32xf32>
    %193 = math.exp %192 : vector<8x32xf32>
    %cst_85 = arith.constant 1.000000e+00 : f32
    %194 = vector.broadcast %cst_85 : f32 to vector<8x32xf32>
    %195 = arith.addf %194, %193 : vector<8x32xf32>
    %196 = arith.divf %194, %195 : vector<8x32xf32>
    %cst_86 = arith.constant dense<0.000000e+00> : vector<8x32xf32>
    %197 = tpu.matmul %175, %5, %cst_86 {dimension_numbers = #tpu.dot_dimension_numbers<[1], [0], [0], [1], [0, 0, 1, 1], [], []>} : vector<8x4xbf16>, vector<4x32xbf16>, vector<8x32xf32> -> vector<8x32xf32>
    %cst_87 = arith.constant dense<0.000000e+00> : vector<8x32xf32>
    %198 = tpu.matmul %176, %13, %cst_87 {dimension_numbers = #tpu.dot_dimension_numbers<[1], [0], [0], [1], [0, 0, 1, 1], [], []>} : vector<8x32xbf16>, vector<32x32xbf16>, vector<8x32xf32> -> vector<8x32xf32>
    %199 = arith.addf %197, %198 : vector<8x32xf32>
    %200 = vector.broadcast %21 : vector<1x32xf32> to vector<8x32xf32>
    %201 = arith.addf %199, %200 : vector<8x32xf32>
    %202 = math.tanh %201 : vector<8x32xf32>
    %cst_88 = arith.constant dense<0.000000e+00> : vector<8x32xf32>
    %203 = tpu.matmul %175, %7, %cst_88 {dimension_numbers = #tpu.dot_dimension_numbers<[1], [0], [0], [1], [0, 0, 1, 1], [], []>} : vector<8x4xbf16>, vector<4x32xbf16>, vector<8x32xf32> -> vector<8x32xf32>
    %cst_89 = arith.constant dense<0.000000e+00> : vector<8x32xf32>
    %204 = tpu.matmul %176, %15, %cst_89 {dimension_numbers = #tpu.dot_dimension_numbers<[1], [0], [0], [1], [0, 0, 1, 1], [], []>} : vector<8x32xbf16>, vector<32x32xbf16>, vector<8x32xf32> -> vector<8x32xf32>
    %205 = arith.addf %203, %204 : vector<8x32xf32>
    %206 = vector.broadcast %23 : vector<1x32xf32> to vector<8x32xf32>
    %207 = arith.addf %205, %206 : vector<8x32xf32>
    %208 = arith.negf %207 : vector<8x32xf32>
    %209 = math.exp %208 : vector<8x32xf32>
    %cst_90 = arith.constant 1.000000e+00 : f32
    %210 = vector.broadcast %cst_90 : f32 to vector<8x32xf32>
    %211 = arith.addf %210, %209 : vector<8x32xf32>
    %212 = arith.divf %210, %211 : vector<8x32xf32>
    %213 = arith.mulf %196, %166 : vector<8x32xf32>
    %214 = arith.mulf %186, %202 : vector<8x32xf32>
    %215 = arith.addf %213, %214 : vector<8x32xf32>
    %216 = math.tanh %215 : vector<8x32xf32>
    %217 = arith.mulf %212, %216 : vector<8x32xf32>
    %218 = arith.index_cast %c3_i32 : i32 to index
    %c0_91 = arith.constant 0 : index
    %c0_92 = arith.constant 0 : index
    %219 = vector.load %arg5[%218, %c0_91, %c0_92] : memref<8x8x32xf32, #tpu.memory_space<vmem>>, vector<1x8x32xf32>
    %220 = vector.shape_cast %219 : vector<1x8x32xf32> to vector<8x32xf32>
    %221 = vector.shape_cast %217 : vector<8x32xf32> to vector<1x8x32xf32>
    tpu.vector_store %arg5[%218, %c0_91, %c0_92], %221 {strides = array<i32>} : memref<8x8x32xf32, #tpu.memory_space<vmem>>, vector<1x8x32xf32>,
    %c4_i32 = arith.constant 4 : i32
    %222 = arith.index_cast %c4_i32 : i32 to index
    %c0_93 = arith.constant 0 : index
    %c0_94 = arith.constant 0 : index
    %223 = vector.load %arg1[%222, %c0_93, %c0_94] : memref<8x8x4xbf16, #tpu.memory_space<vmem>>, vector<1x8x4xbf16>
    %224 = vector.shape_cast %223 : vector<1x8x4xbf16> to vector<8x4xbf16>
    %225 = arith.truncf %217 : vector<8x32xf32> to vector<8x32xbf16>
    %cst_95 = arith.constant dense<0.000000e+00> : vector<8x32xf32>
    %226 = tpu.matmul %224, %1, %cst_95 {dimension_numbers = #tpu.dot_dimension_numbers<[1], [0], [0], [1], [0, 0, 1, 1], [], []>} : vector<8x4xbf16>, vector<4x32xbf16>, vector<8x32xf32> -> vector<8x32xf32>
    %cst_96 = arith.constant dense<0.000000e+00> : vector<8x32xf32>
    %227 = tpu.matmul %225, %9, %cst_96 {dimension_numbers = #tpu.dot_dimension_numbers<[1], [0], [0], [1], [0, 0, 1, 1], [], []>} : vector<8x32xbf16>, vector<32x32xbf16>, vector<8x32xf32> -> vector<8x32xf32>
    %228 = arith.addf %226, %227 : vector<8x32xf32>
    %229 = vector.broadcast %17 : vector<1x32xf32> to vector<8x32xf32>
    %230 = arith.addf %228, %229 : vector<8x32xf32>
    %231 = arith.negf %230 : vector<8x32xf32>
    %232 = math.exp %231 : vector<8x32xf32>
    %cst_97 = arith.constant 1.000000e+00 : f32
    %233 = vector.broadcast %cst_97 : f32 to vector<8x32xf32>
    %234 = arith.addf %233, %232 : vector<8x32xf32>
    %235 = arith.divf %233, %234 : vector<8x32xf32>
    %cst_98 = arith.constant dense<0.000000e+00> : vector<8x32xf32>
    %236 = tpu.matmul %224, %3, %cst_98 {dimension_numbers = #tpu.dot_dimension_numbers<[1], [0], [0], [1], [0, 0, 1, 1], [], []>} : vector<8x4xbf16>, vector<4x32xbf16>, vector<8x32xf32> -> vector<8x32xf32>
    %cst_99 = arith.constant dense<0.000000e+00> : vector<8x32xf32>
    %237 = tpu.matmul %225, %11, %cst_99 {dimension_numbers = #tpu.dot_dimension_numbers<[1], [0], [0], [1], [0, 0, 1, 1], [], []>} : vector<8x32xbf16>, vector<32x32xbf16>, vector<8x32xf32> -> vector<8x32xf32>
    %238 = arith.addf %236, %237 : vector<8x32xf32>
    %239 = vector.broadcast %19 : vector<1x32xf32> to vector<8x32xf32>
    %240 = arith.addf %238, %239 : vector<8x32xf32>
    %241 = arith.negf %240 : vector<8x32xf32>
    %242 = math.exp %241 : vector<8x32xf32>
    %cst_100 = arith.constant 1.000000e+00 : f32
    %243 = vector.broadcast %cst_100 : f32 to vector<8x32xf32>
    %244 = arith.addf %243, %242 : vector<8x32xf32>
    %245 = arith.divf %243, %244 : vector<8x32xf32>
    %cst_101 = arith.constant dense<0.000000e+00> : vector<8x32xf32>
    %246 = tpu.matmul %224, %5, %cst_101 {dimension_numbers = #tpu.dot_dimension_numbers<[1], [0], [0], [1], [0, 0, 1, 1], [], []>} : vector<8x4xbf16>, vector<4x32xbf16>, vector<8x32xf32> -> vector<8x32xf32>
    %cst_102 = arith.constant dense<0.000000e+00> : vector<8x32xf32>
    %247 = tpu.matmul %225, %13, %cst_102 {dimension_numbers = #tpu.dot_dimension_numbers<[1], [0], [0], [1], [0, 0, 1, 1], [], []>} : vector<8x32xbf16>, vector<32x32xbf16>, vector<8x32xf32> -> vector<8x32xf32>
    %248 = arith.addf %246, %247 : vector<8x32xf32>
    %249 = vector.broadcast %21 : vector<1x32xf32> to vector<8x32xf32>
    %250 = arith.addf %248, %249 : vector<8x32xf32>
    %251 = math.tanh %250 : vector<8x32xf32>
    %cst_103 = arith.constant dense<0.000000e+00> : vector<8x32xf32>
    %252 = tpu.matmul %224, %7, %cst_103 {dimension_numbers = #tpu.dot_dimension_numbers<[1], [0], [0], [1], [0, 0, 1, 1], [], []>} : vector<8x4xbf16>, vector<4x32xbf16>, vector<8x32xf32> -> vector<8x32xf32>
    %cst_104 = arith.constant dense<0.000000e+00> : vector<8x32xf32>
    %253 = tpu.matmul %225, %15, %cst_104 {dimension_numbers = #tpu.dot_dimension_numbers<[1], [0], [0], [1], [0, 0, 1, 1], [], []>} : vector<8x32xbf16>, vector<32x32xbf16>, vector<8x32xf32> -> vector<8x32xf32>
    %254 = arith.addf %252, %253 : vector<8x32xf32>
    %255 = vector.broadcast %23 : vector<1x32xf32> to vector<8x32xf32>
    %256 = arith.addf %254, %255 : vector<8x32xf32>
    %257 = arith.negf %256 : vector<8x32xf32>
    %258 = math.exp %257 : vector<8x32xf32>
    %cst_105 = arith.constant 1.000000e+00 : f32
    %259 = vector.broadcast %cst_105 : f32 to vector<8x32xf32>
    %260 = arith.addf %259, %258 : vector<8x32xf32>
    %261 = arith.divf %259, %260 : vector<8x32xf32>
    %262 = arith.mulf %245, %215 : vector<8x32xf32>
    %263 = arith.mulf %235, %251 : vector<8x32xf32>
    %264 = arith.addf %262, %263 : vector<8x32xf32>
    %265 = math.tanh %264 : vector<8x32xf32>
    %266 = arith.mulf %261, %265 : vector<8x32xf32>
    %267 = arith.index_cast %c4_i32 : i32 to index
    %c0_106 = arith.constant 0 : index
    %c0_107 = arith.constant 0 : index
    %268 = vector.load %arg5[%267, %c0_106, %c0_107] : memref<8x8x32xf32, #tpu.memory_space<vmem>>, vector<1x8x32xf32>
    %269 = vector.shape_cast %268 : vector<1x8x32xf32> to vector<8x32xf32>
    %270 = vector.shape_cast %266 : vector<8x32xf32> to vector<1x8x32xf32>
    tpu.vector_store %arg5[%267, %c0_106, %c0_107], %270 {strides = array<i32>} : memref<8x8x32xf32, #tpu.memory_space<vmem>>, vector<1x8x32xf32>,
    %c5_i32 = arith.constant 5 : i32
    %271 = arith.index_cast %c5_i32 : i32 to index
    %c0_108 = arith.constant 0 : index
    %c0_109 = arith.constant 0 : index
    %272 = vector.load %arg1[%271, %c0_108, %c0_109] : memref<8x8x4xbf16, #tpu.memory_space<vmem>>, vector<1x8x4xbf16>
    %273 = vector.shape_cast %272 : vector<1x8x4xbf16> to vector<8x4xbf16>
    %274 = arith.truncf %266 : vector<8x32xf32> to vector<8x32xbf16>
    %cst_110 = arith.constant dense<0.000000e+00> : vector<8x32xf32>
    %275 = tpu.matmul %273, %1, %cst_110 {dimension_numbers = #tpu.dot_dimension_numbers<[1], [0], [0], [1], [0, 0, 1, 1], [], []>} : vector<8x4xbf16>, vector<4x32xbf16>, vector<8x32xf32> -> vector<8x32xf32>
    %cst_111 = arith.constant dense<0.000000e+00> : vector<8x32xf32>
    %276 = tpu.matmul %274, %9, %cst_111 {dimension_numbers = #tpu.dot_dimension_numbers<[1], [0], [0], [1], [0, 0, 1, 1], [], []>} : vector<8x32xbf16>, vector<32x32xbf16>, vector<8x32xf32> -> vector<8x32xf32>
    %277 = arith.addf %275, %276 : vector<8x32xf32>
    %278 = vector.broadcast %17 : vector<1x32xf32> to vector<8x32xf32>
    %279 = arith.addf %277, %278 : vector<8x32xf32>
    %280 = arith.negf %279 : vector<8x32xf32>
    %281 = math.exp %280 : vector<8x32xf32>
    %cst_112 = arith.constant 1.000000e+00 : f32
    %282 = vector.broadcast %cst_112 : f32 to vector<8x32xf32>
    %283 = arith.addf %282, %281 : vector<8x32xf32>
    %284 = arith.divf %282, %283 : vector<8x32xf32>
    %cst_113 = arith.constant dense<0.000000e+00> : vector<8x32xf32>
    %285 = tpu.matmul %273, %3, %cst_113 {dimension_numbers = #tpu.dot_dimension_numbers<[1], [0], [0], [1], [0, 0, 1, 1], [], []>} : vector<8x4xbf16>, vector<4x32xbf16>, vector<8x32xf32> -> vector<8x32xf32>
    %cst_114 = arith.constant dense<0.000000e+00> : vector<8x32xf32>
    %286 = tpu.matmul %274, %11, %cst_114 {dimension_numbers = #tpu.dot_dimension_numbers<[1], [0], [0], [1], [0, 0, 1, 1], [], []>} : vector<8x32xbf16>, vector<32x32xbf16>, vector<8x32xf32> -> vector<8x32xf32>
    %287 = arith.addf %285, %286 : vector<8x32xf32>
    %288 = vector.broadcast %19 : vector<1x32xf32> to vector<8x32xf32>
    %289 = arith.addf %287, %288 : vector<8x32xf32>
    %290 = arith.negf %289 : vector<8x32xf32>
    %291 = math.exp %290 : vector<8x32xf32>
    %cst_115 = arith.constant 1.000000e+00 : f32
    %292 = vector.broadcast %cst_115 : f32 to vector<8x32xf32>
    %293 = arith.addf %292, %291 : vector<8x32xf32>
    %294 = arith.divf %292, %293 : vector<8x32xf32>
    %cst_116 = arith.constant dense<0.000000e+00> : vector<8x32xf32>
    %295 = tpu.matmul %273, %5, %cst_116 {dimension_numbers = #tpu.dot_dimension_numbers<[1], [0], [0], [1], [0, 0, 1, 1], [], []>} : vector<8x4xbf16>, vector<4x32xbf16>, vector<8x32xf32> -> vector<8x32xf32>
    %cst_117 = arith.constant dense<0.000000e+00> : vector<8x32xf32>
    %296 = tpu.matmul %274, %13, %cst_117 {dimension_numbers = #tpu.dot_dimension_numbers<[1], [0], [0], [1], [0, 0, 1, 1], [], []>} : vector<8x32xbf16>, vector<32x32xbf16>, vector<8x32xf32> -> vector<8x32xf32>
    %297 = arith.addf %295, %296 : vector<8x32xf32>
    %298 = vector.broadcast %21 : vector<1x32xf32> to vector<8x32xf32>
    %299 = arith.addf %297, %298 : vector<8x32xf32>
    %300 = math.tanh %299 : vector<8x32xf32>
    %cst_118 = arith.constant dense<0.000000e+00> : vector<8x32xf32>
    %301 = tpu.matmul %273, %7, %cst_118 {dimension_numbers = #tpu.dot_dimension_numbers<[1], [0], [0], [1], [0, 0, 1, 1], [], []>} : vector<8x4xbf16>, vector<4x32xbf16>, vector<8x32xf32> -> vector<8x32xf32>
    %cst_119 = arith.constant dense<0.000000e+00> : vector<8x32xf32>
    %302 = tpu.matmul %274, %15, %cst_119 {dimension_numbers = #tpu.dot_dimension_numbers<[1], [0], [0], [1], [0, 0, 1, 1], [], []>} : vector<8x32xbf16>, vector<32x32xbf16>, vector<8x32xf32> -> vector<8x32xf32>
    %303 = arith.addf %301, %302 : vector<8x32xf32>
    %304 = vector.broadcast %23 : vector<1x32xf32> to vector<8x32xf32>
    %305 = arith.addf %303, %304 : vector<8x32xf32>
    %306 = arith.negf %305 : vector<8x32xf32>
    %307 = math.exp %306 : vector<8x32xf32>
    %cst_120 = arith.constant 1.000000e+00 : f32
    %308 = vector.broadcast %cst_120 : f32 to vector<8x32xf32>
    %309 = arith.addf %308, %307 : vector<8x32xf32>
    %310 = arith.divf %308, %309 : vector<8x32xf32>
    %311 = arith.mulf %294, %264 : vector<8x32xf32>
    %312 = arith.mulf %284, %300 : vector<8x32xf32>
    %313 = arith.addf %311, %312 : vector<8x32xf32>
    %314 = math.tanh %313 : vector<8x32xf32>
    %315 = arith.mulf %310, %314 : vector<8x32xf32>
    %316 = arith.index_cast %c5_i32 : i32 to index
    %c0_121 = arith.constant 0 : index
    %c0_122 = arith.constant 0 : index
    %317 = vector.load %arg5[%316, %c0_121, %c0_122] : memref<8x8x32xf32, #tpu.memory_space<vmem>>, vector<1x8x32xf32>
    %318 = vector.shape_cast %317 : vector<1x8x32xf32> to vector<8x32xf32>
    %319 = vector.shape_cast %315 : vector<8x32xf32> to vector<1x8x32xf32>
    tpu.vector_store %arg5[%316, %c0_121, %c0_122], %319 {strides = array<i32>} : memref<8x8x32xf32, #tpu.memory_space<vmem>>, vector<1x8x32xf32>,
    %c6_i32 = arith.constant 6 : i32
    %320 = arith.index_cast %c6_i32 : i32 to index
    %c0_123 = arith.constant 0 : index
    %c0_124 = arith.constant 0 : index
    %321 = vector.load %arg1[%320, %c0_123, %c0_124] : memref<8x8x4xbf16, #tpu.memory_space<vmem>>, vector<1x8x4xbf16>
    %322 = vector.shape_cast %321 : vector<1x8x4xbf16> to vector<8x4xbf16>
    %323 = arith.truncf %315 : vector<8x32xf32> to vector<8x32xbf16>
    %cst_125 = arith.constant dense<0.000000e+00> : vector<8x32xf32>
    %324 = tpu.matmul %322, %1, %cst_125 {dimension_numbers = #tpu.dot_dimension_numbers<[1], [0], [0], [1], [0, 0, 1, 1], [], []>} : vector<8x4xbf16>, vector<4x32xbf16>, vector<8x32xf32> -> vector<8x32xf32>
    %cst_126 = arith.constant dense<0.000000e+00> : vector<8x32xf32>
    %325 = tpu.matmul %323, %9, %cst_126 {dimension_numbers = #tpu.dot_dimension_numbers<[1], [0], [0], [1], [0, 0, 1, 1], [], []>} : vector<8x32xbf16>, vector<32x32xbf16>, vector<8x32xf32> -> vector<8x32xf32>
    %326 = arith.addf %324, %325 : vector<8x32xf32>
    %327 = vector.broadcast %17 : vector<1x32xf32> to vector<8x32xf32>
    %328 = arith.addf %326, %327 : vector<8x32xf32>
    %329 = arith.negf %328 : vector<8x32xf32>
    %330 = math.exp %329 : vector<8x32xf32>
    %cst_127 = arith.constant 1.000000e+00 : f32
    %331 = vector.broadcast %cst_127 : f32 to vector<8x32xf32>
    %332 = arith.addf %331, %330 : vector<8x32xf32>
    %333 = arith.divf %331, %332 : vector<8x32xf32>
    %cst_128 = arith.constant dense<0.000000e+00> : vector<8x32xf32>
    %334 = tpu.matmul %322, %3, %cst_128 {dimension_numbers = #tpu.dot_dimension_numbers<[1], [0], [0], [1], [0, 0, 1, 1], [], []>} : vector<8x4xbf16>, vector<4x32xbf16>, vector<8x32xf32> -> vector<8x32xf32>
    %cst_129 = arith.constant dense<0.000000e+00> : vector<8x32xf32>
    %335 = tpu.matmul %323, %11, %cst_129 {dimension_numbers = #tpu.dot_dimension_numbers<[1], [0], [0], [1], [0, 0, 1, 1], [], []>} : vector<8x32xbf16>, vector<32x32xbf16>, vector<8x32xf32> -> vector<8x32xf32>
    %336 = arith.addf %334, %335 : vector<8x32xf32>
    %337 = vector.broadcast %19 : vector<1x32xf32> to vector<8x32xf32>
    %338 = arith.addf %336, %337 : vector<8x32xf32>
    %339 = arith.negf %338 : vector<8x32xf32>
    %340 = math.exp %339 : vector<8x32xf32>
    %cst_130 = arith.constant 1.000000e+00 : f32
    %341 = vector.broadcast %cst_130 : f32 to vector<8x32xf32>
    %342 = arith.addf %341, %340 : vector<8x32xf32>
    %343 = arith.divf %341, %342 : vector<8x32xf32>
    %cst_131 = arith.constant dense<0.000000e+00> : vector<8x32xf32>
    %344 = tpu.matmul %322, %5, %cst_131 {dimension_numbers = #tpu.dot_dimension_numbers<[1], [0], [0], [1], [0, 0, 1, 1], [], []>} : vector<8x4xbf16>, vector<4x32xbf16>, vector<8x32xf32> -> vector<8x32xf32>
    %cst_132 = arith.constant dense<0.000000e+00> : vector<8x32xf32>
    %345 = tpu.matmul %323, %13, %cst_132 {dimension_numbers = #tpu.dot_dimension_numbers<[1], [0], [0], [1], [0, 0, 1, 1], [], []>} : vector<8x32xbf16>, vector<32x32xbf16>, vector<8x32xf32> -> vector<8x32xf32>
    %346 = arith.addf %344, %345 : vector<8x32xf32>
    %347 = vector.broadcast %21 : vector<1x32xf32> to vector<8x32xf32>
    %348 = arith.addf %346, %347 : vector<8x32xf32>
    %349 = math.tanh %348 : vector<8x32xf32>
    %cst_133 = arith.constant dense<0.000000e+00> : vector<8x32xf32>
    %350 = tpu.matmul %322, %7, %cst_133 {dimension_numbers = #tpu.dot_dimension_numbers<[1], [0], [0], [1], [0, 0, 1, 1], [], []>} : vector<8x4xbf16>, vector<4x32xbf16>, vector<8x32xf32> -> vector<8x32xf32>
    %cst_134 = arith.constant dense<0.000000e+00> : vector<8x32xf32>
    %351 = tpu.matmul %323, %15, %cst_134 {dimension_numbers = #tpu.dot_dimension_numbers<[1], [0], [0], [1], [0, 0, 1, 1], [], []>} : vector<8x32xbf16>, vector<32x32xbf16>, vector<8x32xf32> -> vector<8x32xf32>
    %352 = arith.addf %350, %351 : vector<8x32xf32>
    %353 = vector.broadcast %23 : vector<1x32xf32> to vector<8x32xf32>
    %354 = arith.addf %352, %353 : vector<8x32xf32>
    %355 = arith.negf %354 : vector<8x32xf32>
    %356 = math.exp %355 : vector<8x32xf32>
    %cst_135 = arith.constant 1.000000e+00 : f32
    %357 = vector.broadcast %cst_135 : f32 to vector<8x32xf32>
    %358 = arith.addf %357, %356 : vector<8x32xf32>
    %359 = arith.divf %357, %358 : vector<8x32xf32>
    %360 = arith.mulf %343, %313 : vector<8x32xf32>
    %361 = arith.mulf %333, %349 : vector<8x32xf32>
    %362 = arith.addf %360, %361 : vector<8x32xf32>
    %363 = math.tanh %362 : vector<8x32xf32>
    %364 = arith.mulf %359, %363 : vector<8x32xf32>
    %365 = arith.index_cast %c6_i32 : i32 to index
    %c0_136 = arith.constant 0 : index
    %c0_137 = arith.constant 0 : index
    %366 = vector.load %arg5[%365, %c0_136, %c0_137] : memref<8x8x32xf32, #tpu.memory_space<vmem>>, vector<1x8x32xf32>
    %367 = vector.shape_cast %366 : vector<1x8x32xf32> to vector<8x32xf32>
    %368 = vector.shape_cast %364 : vector<8x32xf32> to vector<1x8x32xf32>
    tpu.vector_store %arg5[%365, %c0_136, %c0_137], %368 {strides = array<i32>} : memref<8x8x32xf32, #tpu.memory_space<vmem>>, vector<1x8x32xf32>,
    %c7_i32 = arith.constant 7 : i32
    %369 = arith.index_cast %c7_i32 : i32 to index
    %c0_138 = arith.constant 0 : index
    %c0_139 = arith.constant 0 : index
    %370 = vector.load %arg1[%369, %c0_138, %c0_139] : memref<8x8x4xbf16, #tpu.memory_space<vmem>>, vector<1x8x4xbf16>
    %371 = vector.shape_cast %370 : vector<1x8x4xbf16> to vector<8x4xbf16>
    %372 = arith.truncf %364 : vector<8x32xf32> to vector<8x32xbf16>
    %cst_140 = arith.constant dense<0.000000e+00> : vector<8x32xf32>
    %373 = tpu.matmul %371, %1, %cst_140 {dimension_numbers = #tpu.dot_dimension_numbers<[1], [0], [0], [1], [0, 0, 1, 1], [], []>} : vector<8x4xbf16>, vector<4x32xbf16>, vector<8x32xf32> -> vector<8x32xf32>
    %cst_141 = arith.constant dense<0.000000e+00> : vector<8x32xf32>
    %374 = tpu.matmul %372, %9, %cst_141 {dimension_numbers = #tpu.dot_dimension_numbers<[1], [0], [0], [1], [0, 0, 1, 1], [], []>} : vector<8x32xbf16>, vector<32x32xbf16>, vector<8x32xf32> -> vector<8x32xf32>
    %375 = arith.addf %373, %374 : vector<8x32xf32>
    %376 = vector.broadcast %17 : vector<1x32xf32> to vector<8x32xf32>
    %377 = arith.addf %375, %376 : vector<8x32xf32>
    %378 = arith.negf %377 : vector<8x32xf32>
    %379 = math.exp %378 : vector<8x32xf32>
    %cst_142 = arith.constant 1.000000e+00 : f32
    %380 = vector.broadcast %cst_142 : f32 to vector<8x32xf32>
    %381 = arith.addf %380, %379 : vector<8x32xf32>
    %382 = arith.divf %380, %381 : vector<8x32xf32>
    %cst_143 = arith.constant dense<0.000000e+00> : vector<8x32xf32>
    %383 = tpu.matmul %371, %3, %cst_143 {dimension_numbers = #tpu.dot_dimension_numbers<[1], [0], [0], [1], [0, 0, 1, 1], [], []>} : vector<8x4xbf16>, vector<4x32xbf16>, vector<8x32xf32> -> vector<8x32xf32>
    %cst_144 = arith.constant dense<0.000000e+00> : vector<8x32xf32>
    %384 = tpu.matmul %372, %11, %cst_144 {dimension_numbers = #tpu.dot_dimension_numbers<[1], [0], [0], [1], [0, 0, 1, 1], [], []>} : vector<8x32xbf16>, vector<32x32xbf16>, vector<8x32xf32> -> vector<8x32xf32>
    %385 = arith.addf %383, %384 : vector<8x32xf32>
    %386 = vector.broadcast %19 : vector<1x32xf32> to vector<8x32xf32>
    %387 = arith.addf %385, %386 : vector<8x32xf32>
    %388 = arith.negf %387 : vector<8x32xf32>
    %389 = math.exp %388 : vector<8x32xf32>
    %cst_145 = arith.constant 1.000000e+00 : f32
    %390 = vector.broadcast %cst_145 : f32 to vector<8x32xf32>
    %391 = arith.addf %390, %389 : vector<8x32xf32>
    %392 = arith.divf %390, %391 : vector<8x32xf32>
    %cst_146 = arith.constant dense<0.000000e+00> : vector<8x32xf32>
    %393 = tpu.matmul %371, %5, %cst_146 {dimension_numbers = #tpu.dot_dimension_numbers<[1], [0], [0], [1], [0, 0, 1, 1], [], []>} : vector<8x4xbf16>, vector<4x32xbf16>, vector<8x32xf32> -> vector<8x32xf32>
    %cst_147 = arith.constant dense<0.000000e+00> : vector<8x32xf32>
    %394 = tpu.matmul %372, %13, %cst_147 {dimension_numbers = #tpu.dot_dimension_numbers<[1], [0], [0], [1], [0, 0, 1, 1], [], []>} : vector<8x32xbf16>, vector<32x32xbf16>, vector<8x32xf32> -> vector<8x32xf32>
    %395 = arith.addf %393, %394 : vector<8x32xf32>
    %396 = vector.broadcast %21 : vector<1x32xf32> to vector<8x32xf32>
    %397 = arith.addf %395, %396 : vector<8x32xf32>
    %398 = math.tanh %397 : vector<8x32xf32>
    %cst_148 = arith.constant dense<0.000000e+00> : vector<8x32xf32>
    %399 = tpu.matmul %371, %7, %cst_148 {dimension_numbers = #tpu.dot_dimension_numbers<[1], [0], [0], [1], [0, 0, 1, 1], [], []>} : vector<8x4xbf16>, vector<4x32xbf16>, vector<8x32xf32> -> vector<8x32xf32>
    %cst_149 = arith.constant dense<0.000000e+00> : vector<8x32xf32>
    %400 = tpu.matmul %372, %15, %cst_149 {dimension_numbers = #tpu.dot_dimension_numbers<[1], [0], [0], [1], [0, 0, 1, 1], [], []>} : vector<8x32xbf16>, vector<32x32xbf16>, vector<8x32xf32> -> vector<8x32xf32>
    %401 = arith.addf %399, %400 : vector<8x32xf32>
    %402 = vector.broadcast %23 : vector<1x32xf32> to vector<8x32xf32>
    %403 = arith.addf %401, %402 : vector<8x32xf32>
    %404 = arith.negf %403 : vector<8x32xf32>
    %405 = math.exp %404 : vector<8x32xf32>
    %cst_150 = arith.constant 1.000000e+00 : f32
    %406 = vector.broadcast %cst_150 : f32 to vector<8x32xf32>
    %407 = arith.addf %406, %405 : vector<8x32xf32>
    %408 = arith.divf %406, %407 : vector<8x32xf32>
    %409 = arith.mulf %392, %362 : vector<8x32xf32>
    %410 = arith.mulf %382, %398 : vector<8x32xf32>
    %411 = arith.addf %409, %410 : vector<8x32xf32>
    %412 = math.tanh %411 : vector<8x32xf32>
    %413 = arith.mulf %408, %412 : vector<8x32xf32>
    %414 = arith.index_cast %c7_i32 : i32 to index
    %c0_151 = arith.constant 0 : index
    %c0_152 = arith.constant 0 : index
    %415 = vector.load %arg5[%414, %c0_151, %c0_152] : memref<8x8x32xf32, #tpu.memory_space<vmem>>, vector<1x8x32xf32>
    %416 = vector.shape_cast %415 : vector<1x8x32xf32> to vector<8x32xf32>
    %417 = vector.shape_cast %413 : vector<8x32xf32> to vector<1x8x32xf32>
    tpu.vector_store %arg5[%414, %c0_151, %c0_152], %417 {strides = array<i32>} : memref<8x8x32xf32, #tpu.memory_space<vmem>>, vector<1x8x32xf32>,
    %c8_i32 = arith.constant 8 : i32
    %c0_153 = arith.constant 0 : index
    %c0_154 = arith.constant 0 : index
    %418 = vector.load %arg6[%c0_153, %c0_154] : memref<8x32xf32, #tpu.memory_space<vmem>>, vector<8x32xf32>
    tpu.vector_store %arg6[%c0_153, %c0_154], %411 {strides = array<i32>} : memref<8x32xf32, #tpu.memory_space<vmem>>, vector<8x32xf32>,
    return
  }
  func.func @transform_0(%arg0: i32) -> (i32, i32, i32) {
    %c0_i32 = arith.constant 0 : i32
    %c0_i32_0 = arith.constant 0 : i32
    %c0_i32_1 = arith.constant 0 : i32
    %c0_i32_2 = arith.constant 0 : i32
    return %c0_i32, %c0_i32_0, %c0_i32_1 : i32, i32, i32
  }
  func.func @transform_1(%arg0: i32) -> (i32, i32, i32) {
    %c0_i32 = arith.constant 0 : i32
    %c0_i32_0 = arith.constant 0 : i32
    %c0_i32_1 = arith.constant 0 : i32
    %c0_i32_2 = arith.constant 0 : i32
    return %c0_i32, %c0_i32_0, %c0_i32_1 : i32, i32, i32
  }
  func.func @transform_2(%arg0: i32) -> (i32, i32, i32) {
    %c0_i32 = arith.constant 0 : i32
    %c0_i32_0 = arith.constant 0 : i32
    %c0_i32_1 = arith.constant 0 : i32
    %c0_i32_2 = arith.constant 0 : i32
    return %c0_i32, %c0_i32_0, %c0_i32_1 : i32, i32, i32
  }
  func.func @transform_3(%arg0: i32) -> (i32, i32, i32) {
    %c0_i32 = arith.constant 0 : i32
    %c0_i32_0 = arith.constant 0 : i32
    %c0_i32_1 = arith.constant 0 : i32
    %c0_i32_2 = arith.constant 0 : i32
    return %c0_i32, %c0_i32_0, %c0_i32_1 : i32, i32, i32
  }
  func.func @transform_4(%arg0: i32) -> (i32, i32, i32) {
    %c0_i32 = arith.constant 0 : i32
    %c0_i32_0 = arith.constant 0 : i32
    %c0_i32_1 = arith.constant 0 : i32
    %c0_i32_2 = arith.constant 0 : i32
    return %c0_i32, %c0_i32_0, %c0_i32_1 : i32, i32, i32
  }
  func.func @transform_5(%arg0: i32) -> (i32, i32) {
    %c0_i32 = arith.constant 0 : i32
    %c0_i32_0 = arith.constant 0 : i32
    %c0_i32_1 = arith.constant 0 : i32
    return %c0_i32, %c0_i32_0 : i32, i32
  }
}

</mosaic_0001>

<bundles_post_ra>
// kernel: tpu_custom_call.1
= control target key start
LH: loop header
LB: loop body
LE: loop exit
PB: predicated region body
PF: predicated region fallthrough
CT: control target
= control target key end

     0   :  { %11 = vsyncpa [#allocation3], 0  ;;  %s4649_s0 = inlined_call_operand.vmem [shape: bf16[8,8,4], index: 0, kind: input, shape index: {}]   ;;  %s4650_s1 = inlined_call_operand.vmem [shape: bf16[4,4,32], index: 1, kind: input, shape index: {}]   ;;  %s4651_s2 = inlined_call_operand.hbm [shape: bf16[4,32,32], index: 2, kind: input, shape index: {}]   ;;  %s4652_s3 = inlined_call_operand.vmem [shape: f32[4,1,32], index: 3, kind: input, shape index: {}]   ;;  %s4653_s4 = inlined_call_operand.hbm [shape: f32[8,8,32], index: 4, kind: output, shape index: {0}]   ;;  %s4654_s5 = inlined_call_operand.hbm [shape: f32[8,32], index: 5, kind: output, shape index: {1}]  }
   0x1   :  { %12 = vsyncpa [#allocation4], 0 }
   0x2   :  { %13 = vsyncpa [#allocation7], 0  ;;  %s4004_s18 = smov [#allocation2]   ;;  %s3932_s22 = scalar_lea.hbm %s4651_s2, 1024 }
   0x3   :  { %s23_s19 = sshll.u32 %s4004_s18, 4  ;;  %p3933_p0 = scmp.ne.s32.totalorder %s4651_s2, %s3932_s22  ;;  %s24_s19 = int_to_ptr.vmem [resolvable:$true] %s23_s19 }
   0x4   :  { %p3936_p1 = scmp.lt.u32.totalorder %s3932_s22, %s4651_s2 }
   0x6   :  { %p3938_p2 = pnand %p3936_p1, %p3933_p0 }
   0x8   :  { %3941 = shalt.err (!%p3938_p2)
}
   0x9   :  { %s3942_s27 = scalar_lea.vmem %s24_s19, 1024  ;;  %p3947_p4 = scmp.lt.s32.totalorder %s24_s19, %s24_s19 }
   0xa   :  { %p3943_p3 = scmp.ne.s32.totalorder %s24_s19, %s3942_s27  ;;  %p3948_p5 = scmp.lt.s32.totalorder %s3942_s27, %s3942_s27 }
   0xc   :  { %p3949_p6 = por %p3948_p5, %p3947_p4 }
   0xe   :  { %p3950_p7 = pnand %p3949_p6, %p3943_p3 }
  0x10   :  { %3953 = shalt.err (!%p3950_p7)
}
  0x11   :  { %s4005_s28 = smov 64   ;;  %s4006_s29 = smov 4  }
  0x12   :  { %29 = dma.hbm_to_vmem [thread:$0]  %s4651_s2, 1024, %s24_s19, [#allocation3], %s4005_s28, %s4005_s28, %s4006_s29  }
  0x13   :  { %3998 = dma.done.wait [#allocation3], 1024  }
  0x14   :  { %3999 = vsyncadd [#allocation3], 4294966272  ;;  %v4007_v0 = vmov 0.0   ;;  %vm4008_vm0 = vmmov 0   ;;  %vm130_vm1 = vcmask 1041408   ;;  %v4062_v1 = vld [vmem:[#allocation2] sm:$0xff]  }
  0x15   :  { %3326 = vmatprep.subr.bf16.mxu0 %v4007_v0  ;;  %3334 = vmatprep.subr.bf16.mxu1 %v4007_v0  ;;  %v36_v2 = vld [vmem:[%s4650_s1] sm:$0x3]  ;;  %v4071_v4 = vld [vmem:[#allocation2 + $0x8] sm:$0xff]   ;;  %vm126_vm2 = vcmask 31744   ;;  %v4078_v6 = vld [vmem:[#allocation2 + $0x10] sm:$0xff]   ;;  %v4009_v10 = vmov 0  }
  0x16   :  { %3336 = vmatprep.mubr.msk.bf16.mxu1 %vm4008_vm0, %v4007_v0  ;;  %3330 = vmatprep.mubr.msk.bf16.mxu0 %vm4008_vm0, %v4007_v0  ;;  %v4069_v3 = vsel %vm130_vm1, %v36_v2, 0  ;;  %v69_v5 = vld [vmem:[%s4649_s0] sm:$0xf]  ;;  %v4091_v9 = vld [vmem:[#allocation2 + $0x18] sm:$0xff]   ;;  %v3058_v12 = vld [vmem:[%s4650_s1 + $0x4] sm:$0x3] }
  0x17   :  { %3327 = vmatpush3.bf16.msra.mxu0 %v4062_v1  ;;  %3335 = vmatpush3.bf16.msra.mxu1 %v4069_v3  ;;  %v3057_v7 = vld [vmem:[%s4650_s1 + $0x2] sm:$0x3]  ;;  %v4109_v13 = vsel %vm130_vm1, %v3058_v12, 0  ;;  %v4111_v14 = vld [vmem:[#allocation2 + $0x28] sm:$0xff]   ;;  %v4121_v15 = vld [vmem:[#allocation2 + $0x30] sm:$0xff]   ;;  %vm82_vm3 = vcmask 261120  }
  0x18   :  { %3328 = vmatprep.subr.bf16.mxu0 %v4007_v0  ;;  %3340 = vmatprep.subr.bf16.mxu1 %v4007_v0  ;;  %v4089_v8 = vsel %vm130_vm1, %v3057_v7, 0  ;;  %v4100_v11 = vld [vmem:[#allocation2 + $0x20] sm:$0xff]   ;;  %v4132_v18 = vld [vmem:[#allocation2 + $0x38] sm:$0xff]  }
  0x19   :  { %v3059_v16 = vld [vmem:[%s4650_s1 + $0x6] sm:$0x3]  ;;  %v4181_v23 = vld [vmem:[%s4652_s3] ss:$0 sm:$0xff]  ;;  %v4187_v35 = vld [vmem:[%s4652_s3 + $0x1] ss:$0 sm:$0xff] }
  0x1a   :  { %3337 = vmatmul.mubr.msk.bf16.vlgmr.msra.gmra.mrb[0].mxu1 %vm126_vm2, %v69_v5  ;;  %v4130_v17 = vsel %vm130_vm1, %v3059_v16, 0  ;;  %v3082_v19 = vld [vmem:[%s4649_s0 + $0x4] sm:$0xf]  ;;  %v4193_v47 = vld [vmem:[%s4652_s3 + $0x2] ss:$0 sm:$0xff] }
  0x1b   :  { %3329 = vmatpush3.bf16.msra.mxu0 %v4071_v4  ;;  %3341 = vmatpush3.bf16.msra.mxu1 %v4078_v6  ;;  %v4199_v60 = vld [vmem:[%s4652_s3 + $0x3] ss:$0 sm:$0xff] }
  0x1c   :  { %3348 = vmatprep.subr.bf16.mxu0 %v4007_v0  ;;  %3342 = vmatprep.subr.bf16.mxu1 %v4007_v0 }
  0x1d   :  { %3344 = vmatprep.mubr.msk.bf16.mxu1 %vm4008_vm0, %v4007_v0 }
  0x1e   :  { %3331 = vmatmul.mubr.bf16.vlgmr.msra.gmra.mrb[0].mxu0 %v4009_v10 }
  0x1f   :  { %3349 = vmatpush3.bf16.msra.mxu0 %v4089_v8  ;;  %3350 = vmatprep.mubr.msk.bf16.mxu0 %vm4008_vm0, %v4007_v0 }
  0x20   :  { %3343 = vmatpush3.bf16.msra.mxu1 %v4091_v9  ;;  %3362 = vmatprep.subr.bf16.mxu0 %v4007_v0 }
  0x21   :  { %3354 = vmatprep.subr.bf16.mxu1 %v4007_v0 }
  0x23   :  { %3345 = vmatmul.mubr.bf16.vlgmr.msra.gmra.mrb[4].mxu1 %v4009_v10 }
  0x24   :  { %3355 = vmatpush3.bf16.msra.mxu1 %v4100_v11  ;;  %3358 = vmatprep.mubr.msk.bf16.mxu1 %vm4008_vm0, %v4007_v0 }
  0x25   :  { %3356 = vmatprep.subr.bf16.mxu1 %v4007_v0 }
  0x26   :  { %3351 = vmatmul.mubr.msk.bf16.vlgmr.msra.gmra.mrb[4].mxu0 %vm126_vm2, %v69_v5 }
  0x27   :  { %3363 = vmatpush3.bf16.msra.mxu0 %v4109_v13  ;;  %3364 = vmatprep.mubr.msk.bf16.mxu0 %vm4008_vm0, %v4007_v0 }
  0x28   :  { %3357 = vmatpush3.bf16.msra.mxu1 %v4111_v14  ;;  %3376 = vmatprep.subr.bf16.mxu0 %v4007_v0 }
  0x29   :  { %3368 = vmatprep.subr.bf16.mxu1 %v4007_v0 }
  0x2b   :  { %3359 = vmatmul.mubr.bf16.vlgmr.msra.gmra.mrb[8].mxu1 %v4009_v10 }
  0x2c   :  { %3369 = vmatpush3.bf16.msra.mxu1 %v4121_v15  ;;  %3372 = vmatprep.mubr.msk.bf16.mxu1 %vm4008_vm0, %v4007_v0 }
  0x2d   :  { %3370 = vmatprep.subr.bf16.mxu1 %v4007_v0 }
  0x2e   :  { %3365 = vmatmul.mubr.msk.bf16.vlgmr.msra.gmra.mrb[8].mxu0 %vm126_vm2, %v69_v5 }
  0x2f   :  { %3377 = vmatpush3.bf16.msra.mxu0 %v4130_v17  ;;  %3378 = vmatprep.mubr.msk.bf16.mxu0 %vm4008_vm0, %v4007_v0 }
  0x30   :  { %3371 = vmatpush3.bf16.msra.mxu1 %v4132_v18  ;;  %3390 = vmatprep.subr.bf16.mxu0 %v4007_v0 }
  0x31   :  { %3382 = vmatprep.subr.bf16.mxu1 %v4007_v0 }
  0x33   :  { %3373 = vmatmul.mubr.bf16.vlgmr.msra.gmra.mrb[12].mxu1 %v4009_v10 }
  0x34   :  { %3383 = vmatpush3.bf16.msra.mxu1 %v4062_v1  ;;  %3386 = vmatprep.mubr.msk.bf16.mxu1 %vm4008_vm0, %v4007_v0 }
  0x35   :  { %3384 = vmatprep.subr.bf16.mxu1 %v4007_v0 }
  0x36   :  { %3379 = vmatmul.mubr.msk.bf16.vlgmr.msra.gmra.mrb[12].mxu0 %vm126_vm2, %v69_v5 }
  0x37   :  { %3391 = vmatpush3.bf16.msra.mxu0 %v4069_v3  ;;  %3392 = vmatprep.mubr.msk.bf16.mxu0 %vm4008_vm0, %v4007_v0 }
  0x38   :  { %3385 = vmatpush3.bf16.msra.mxu1 %v4071_v4  ;;  %3404 = vmatprep.subr.bf16.mxu0 %v4007_v0 }
  0x39   :  { %3396 = vmatprep.subr.bf16.mxu1 %v4007_v0 }
  0x3e   :  { %3393 = vmatmul.mubr.msk.bf16.vlgmr.msra.gmra.mrb[16].mxu0 %vm126_vm2, %v3082_v19 }
  0x3f   :  { %3405 = vmatpush3.bf16.msra.mxu0 %v4089_v8  ;;  %3406 = vmatprep.mubr.msk.bf16.mxu0 %vm4008_vm0, %v4007_v0 }
  0x40   :  { %3418 = vmatprep.subr.bf16.mxu0 %v4007_v0 }
  0x46   :  { %3407 = vmatmul.mubr.msk.bf16.vlgmr.msra.gmra.mrb[20].mxu0 %vm126_vm2, %v3082_v19 }
  0x47   :  { %3419 = vmatpush3.bf16.msra.mxu0 %v4109_v13  ;;  %3420 = vmatprep.mubr.msk.bf16.mxu0 %vm4008_vm0, %v4007_v0 }
  0x48   :  { %3432 = vmatprep.subr.bf16.mxu0 %v4007_v0 }
  0x4e   :  { %3421 = vmatmul.mubr.msk.bf16.vlgmr.msra.gmra.mrb[24].mxu0 %vm126_vm2, %v3082_v19 }
  0x4f   :  { %3433 = vmatpush3.bf16.msra.mxu0 %v4130_v17  ;;  %3434 = vmatprep.mubr.msk.bf16.mxu0 %vm4008_vm0, %v4007_v0 }
  0x50   :  { %3446 = vmatprep.subr.bf16.mxu0 %v4007_v0 }
  0x56   :  { %3435 = vmatmul.mubr.msk.bf16.vlgmr.msra.gmra.mrb[28].mxu0 %vm126_vm2, %v3082_v19 }
  0x57   :  { %3447 = vmatpush3.bf16.msra.mxu0 %v4069_v3  ;;  %3448 = vmatprep.mubr.msk.bf16.mxu0 %vm4008_vm0, %v4007_v0 }
  0x58   :  { %3460 = vmatprep.subr.bf16.mxu0 %v4007_v0 }
  0xed   :  { %v168_v20 = vpop.f32.mrb[0].mxu1 }
  0xee   :  { %v3338_v21 = vpop.f32.mrb[1].mxu1 }
  0xef   :  { %v171_v22 = vpop.f32.mrb[2].mxu1 }
  0xf0   :  { %v3339_v25 = vpop.f32.mrb[3].mxu1 }
  0xf1   :  { %v120_v24 = vpop.f32.mrb[0].mxu0 }
  0xf2   :  { %v169_v26 = vadd.f32 %v168_v20, %v120_v24  ;;  %v3332_v27 = vpop.f32.mrb[1].mxu0 }
  0xf3   :  { %v123_v28 = vpop.f32.mrb[2].mxu0 }
  0xf4   :  { %v180_v29 = vadd.f32 %v4181_v23, %v169_v26  ;;  %v3333_v30 = vpop.f32.mrb[3].mxu0 }
  0xf6   :  { %v3067_v31 = vmul.f32 -1.442695, %v180_v29  ;;  %v233_v32 = vpop.f32.mrb[4].mxu1 }
  0xf7   :  { %v3346_v33 = vpop.f32.mrb[5].mxu1 }
  0xf8   :  { %3792 = vpow2.f32 %v3067_v31  ;;  %v236_v34 = vpop.f32.mrb[6].mxu1 }
  0xf9   :  { %v276_v36 = vpop.f32.mrb[4].mxu0  ;;  %v3347_v37 = vpop.f32.mrb[7].mxu1 }
  0xfa   :  { %v277_v38 = vadd.f32 %v276_v36, %v233_v32  ;;  %v3352_v39 = vpop.f32.mrb[5].mxu0 }
  0xfb   :  { %v279_v40 = vpop.f32.mrb[6].mxu0 }
  0xfc   :  { %v288_v41 = vadd.f32 %v4187_v35, %v277_v38  ;;  %v3353_v42 = vpop.f32.mrb[7].mxu0 }
  0xfe   :  { %v3072_v43 = vmul.f32 -1.442695, %v288_v41  ;;  %v341_v44 = vpop.f32.mrb[8].mxu1 }
  0xff   :  { %v3360_v45 = vpop.f32.mrb[9].mxu1 }
 0x100   :  { %3794 = vpow2.f32 %v3072_v43  ;;  %v344_v46 = vpop.f32.mrb[10].mxu1 }
 0x101   :  { %v384_v48 = vpop.f32.mrb[8].mxu0  ;;  %v3361_v49 = vpop.f32.mrb[11].mxu1 }
 0x102   :  { %v3793_v50 = vpop.eup %3792  ;;  %v385_v51 = vadd.f32 %v384_v48, %v341_v44  ;;  %v3366_v52 = vpop.f32.mrb[9].mxu0 }
 0x103   :  { %v184_v53 = vadd.f32 1.0, %v3793_v50  ;;  %v387_v54 = vpop.f32.mrb[10].mxu0 }
 0x104   :  { %v396_v55 = vadd.f32 %v4193_v47, %v385_v51  ;;  %v3367_v56 = vpop.f32.mrb[11].mxu0  ;;  %v3094_v51 = vld [vmem:[%s4649_s0 + $0x8] sm:$0xf] }
 0x105   :  { %3796 = vrcp.f32 %v184_v53  ;;  %3449 = vmatmul.mubr.msk.bf16.vlgmr.msra.gmra.mrb[32].mxu0 %vm126_vm2, %v3094_v51 }
 0x106   :  { %3798 = vtanh.f32 %v396_v55  ;;  %v444_v57 = vpop.f32.mrb[12].mxu1  ;;  %3461 = vmatpush3.bf16.msra.mxu0 %v4089_v8  ;;  %3462 = vmatprep.mubr.msk.bf16.mxu0 %vm4008_vm0, %v4007_v0 }
 0x107   :  { %v3374_v58 = vpop.f32.mrb[13].mxu1  ;;  %3474 = vmatprep.subr.bf16.mxu0 %v4007_v0 }
 0x108   :  { %v447_v59 = vpop.f32.mrb[14].mxu1 }
 0x109   :  { %v487_v61 = vpop.f32.mrb[12].mxu0  ;;  %v3375_v62 = vpop.f32.mrb[15].mxu1 }
 0x10a   :  { %v3795_v63 = vpop.eup %3794  ;;  %v488_v2 = vadd.f32 %v487_v61, %v444_v57  ;;  %v3380_v5 = vpop.f32.mrb[13].mxu0 }
 0x10b   :  { %v292_v7 = vadd.f32 1.0, %v3795_v63  ;;  %v490_v10 = vpop.f32.mrb[14].mxu0 }
 0x10c   :  { %v499_v12 = vadd.f32 %v4199_v60, %v488_v2  ;;  %v3381_v16 = vpop.f32.mrb[15].mxu0 }
 0x10d   :  { %3800 = vrcp.f32 %v292_v7  ;;  %3463 = vmatmul.mubr.msk.bf16.vlgmr.msra.gmra.mrb[36].mxu0 %vm126_vm2, %v3094_v51 }
 0x10e   :  { %v3081_v19 = vmul.f32 -1.442695, %v499_v12  ;;  %3475 = vmatpush3.bf16.msra.mxu0 %v4109_v13  ;;  %3476 = vmatprep.mubr.msk.bf16.mxu0 %vm4008_vm0, %v4007_v0 }
 0x10f   :  { %v3797_v20 = vpop.eup %3796  ;;  %3488 = vmatprep.subr.bf16.mxu0 %v4007_v0 }
 0x110   :  { %v3799_v21 = vpop.eup %3798  ;;  %3802 = vpow2.f32 %v3081_v19 }
 0x111   :  { %v507_v22 = vmul.f32 %v3799_v21, %v3797_v20  ;;  %v595_v33 = vpop.f32.mrb[16].mxu0 }
 0x112   :  { %v3394_v34 = vpop.f32.mrb[17].mxu0 }
 0x113   :  { %v598_v36 = vpop.f32.mrb[18].mxu0 }
 0x114   :  { %v3395_v37 = vpop.f32.mrb[19].mxu0 }
 0x115   :  { %3477 = vmatmul.mubr.msk.bf16.vlgmr.msra.gmra.mrb[40].mxu0 %vm126_vm2, %v3094_v51 }
 0x116   :  { %3489 = vmatpush3.bf16.msra.mxu0 %v4130_v17  ;;  %3490 = vmatprep.mubr.msk.bf16.mxu0 %vm4008_vm0, %v4007_v0 }
 0x117   :  { %v3801_v24 = vpop.eup %3800  ;;  %3502 = vmatprep.subr.bf16.mxu0 %v4007_v0 }
 0x118   :  { %v506_v25 = vmul.f32 0.0, %v3801_v24 }
 0x119   :  { %v682_v38 = vpop.f32.mrb[20].mxu0 }
 0x11a   :  { %v3803_v26 = vpop.eup %3802  ;;  %v4202_v27 = vadd.f32 %v507_v22, %v506_v25  ;;  %v3408_v39 = vpop.f32.mrb[21].mxu0 }
 0x11b   :  { %v503_v28 = vadd.f32 1.0, %v3803_v26  ;;  %v685_v40 = vpop.f32.mrb[22].mxu0 }
 0x11c   :  { %3804 = vtanh.f32 %v4202_v27  ;;  %v3409_v41 = vpop.f32.mrb[23].mxu0 }
 0x11d   :  { %3806 = vrcp.f32 %v503_v28  ;;  %3491 = vmatmul.mubr.msk.bf16.vlgmr.msra.gmra.mrb[44].mxu0 %vm126_vm2, %v3094_v51 }
 0x11e   :  { %3503 = vmatpush3.bf16.msra.mxu0 %v4069_v3  ;;  %3504 = vmatprep.mubr.msk.bf16.mxu0 %vm4008_vm0, %v4007_v0 }
 0x11f   :  { %3516 = vmatprep.subr.bf16.mxu0 %v4007_v0 }
 0x121   :  { %v769_v42 = vpop.f32.mrb[24].mxu0 }
 0x122   :  { %v3422_v43 = vpop.f32.mrb[25].mxu0 }
 0x123   :  { %v772_v44 = vpop.f32.mrb[26].mxu0 }
 0x124   :  { %v3423_v45 = vpop.f32.mrb[27].mxu0 }
 0x126   :  { %v3805_v29 = vpop.eup %3804 }
 0x127   :  { %v3807_v30 = vpop.eup %3806 }
 0x128   :  { %v510_v31 = vmul.f32 %v3807_v30, %v3805_v29 }
 0x129   :  { %v851_v46 = vpop.f32.mrb[28].mxu0 }
 0x12a   :  { %511 = vst.msk [vmem:[#allocation5] sm:$0xff] %vm82_vm3, %v510_v31  ;;  %v514_v32 = vpack.c.bf16 %v510_v31, %v510_v31  ;;  %v3436_v48 = vpop.f32.mrb[29].mxu0 }
 0x12b   :  { %v854_v49 = vpop.f32.mrb[30].mxu0 }
 0x12c   :  { %3387 = vmatmul.mubr.msk.bf16.vlgmr.msra.gmra.mrb[16].mxu1 %vm82_vm3, %v514_v32  ;;  %v3437_v50 = vpop.f32.mrb[31].mxu0 }
 0x12d   :  { %3397 = vmatpush3.bf16.msra.mxu1 %v4078_v6  ;;  %3400 = vmatprep.mubr.msk.bf16.mxu1 %vm4008_vm0, %v4007_v0 }
 0x12e   :  { %3398 = vmatprep.subr.bf16.mxu1 %v4007_v0 }
 0x131   :  { %3399 = vmatpush3.bf16.msra.mxu1 %v4091_v9 }
 0x132   :  { %3410 = vmatprep.subr.bf16.mxu1 %v4007_v0 }
 0x134   :  { %3401 = vmatmul.mubr.msk.bf16.vlgmr.msra.gmra.mrb[20].mxu1 %vm82_vm3, %v514_v32 }
 0x135   :  { %3411 = vmatpush3.bf16.msra.mxu1 %v4100_v11  ;;  %3414 = vmatprep.mubr.msk.bf16.mxu1 %vm4008_vm0, %v4007_v0 }
 0x136   :  { %3412 = vmatprep.subr.bf16.mxu1 %v4007_v0 }
 0x139   :  { %3413 = vmatpush3.bf16.msra.mxu1 %v4111_v14 }
 0x13a   :  { %3424 = vmatprep.subr.bf16.mxu1 %v4007_v0 }
 0x13c   :  { %3415 = vmatmul.mubr.msk.bf16.vlgmr.msra.gmra.mrb[24].mxu1 %vm82_vm3, %v514_v32 }
 0x13d   :  { %3425 = vmatpush3.bf16.msra.mxu1 %v4121_v15  ;;  %3428 = vmatprep.mubr.msk.bf16.mxu1 %vm4008_vm0, %v4007_v0 }
 0x13e   :  { %3426 = vmatprep.subr.bf16.mxu1 %v4007_v0 }
 0x141   :  { %3427 = vmatpush3.bf16.msra.mxu1 %v4132_v18 }
 0x142   :  { %3438 = vmatprep.subr.bf16.mxu1 %v4007_v0 }
 0x144   :  { %3429 = vmatmul.mubr.msk.bf16.vlgmr.msra.gmra.mrb[28].mxu1 %vm82_vm3, %v514_v32 }
 0x145   :  { %3439 = vmatpush3.bf16.msra.mxu1 %v4062_v1  ;;  %3442 = vmatprep.mubr.msk.bf16.mxu1 %vm4008_vm0, %v4007_v0 }
 0x146   :  { %3440 = vmatprep.subr.bf16.mxu1 %v4007_v0 }
 0x149   :  { %3441 = vmatpush3.bf16.msra.mxu1 %v4071_v4 }
 0x14a   :  { %3452 = vmatprep.subr.bf16.mxu1 %v4007_v0 }
 0x1ff   :  { %v552_v52 = vpop.f32.mrb[16].mxu1 }
 0x200   :  { %v596_v53 = vadd.f32 %v595_v33, %v552_v52  ;;  %v3388_v54 = vpop.f32.mrb[17].mxu1 }
 0x201   :  { %v555_v55 = vpop.f32.mrb[18].mxu1 }
 0x202   :  { %v601_v56 = vadd.f32 %v4181_v23, %v596_v53  ;;  %v3389_v57 = vpop.f32.mrb[19].mxu1 }
 0x204   :  { %v3085_v58 = vmul.f32 -1.442695, %v601_v56 }
 0x206   :  { %3808 = vpow2.f32 %v3085_v58 }
 0x207   :  { %v642_v59 = vpop.f32.mrb[20].mxu1 }
 0x208   :  { %v683_v61 = vadd.f32 %v682_v38, %v642_v59  ;;  %v3402_v62 = vpop.f32.mrb[21].mxu1 }
 0x209   :  { %v645_v63 = vpop.f32.mrb[22].mxu1 }
 0x20a   :  { %v688_v2 = vadd.f32 %v4187_v35, %v683_v61  ;;  %v3403_v5 = vpop.f32.mrb[23].mxu1 }
 0x20b   :  { %v3106_v5 = vld [vmem:[%s4649_s0 + $0xc] sm:$0xf] }
 0x20c   :  { %v3088_v7 = vmul.f32 -1.442695, %v688_v2  ;;  %3505 = vmatmul.mubr.msk.bf16.vlgmr.msra.gmra.mrb[48].mxu0 %vm126_vm2, %v3106_v5 }
 0x20d   :  { %3517 = vmatpush3.bf16.msra.mxu0 %v4089_v8  ;;  %3518 = vmatprep.mubr.msk.bf16.mxu0 %vm4008_vm0, %v4007_v0 }
 0x20e   :  { %3810 = vpow2.f32 %v3088_v7  ;;  %3530 = vmatprep.subr.bf16.mxu0 %v4007_v0 }
 0x20f   :  { %v729_v10 = vpop.f32.mrb[24].mxu1 }
 0x210   :  { %v3809_v12 = vpop.eup %3808  ;;  %v770_v16 = vadd.f32 %v769_v42, %v729_v10  ;;  %v3416_v19 = vpop.f32.mrb[25].mxu1 }
 0x211   :  { %v605_v20 = vadd.f32 1.0, %v3809_v12  ;;  %v732_v21 = vpop.f32.mrb[26].mxu1 }
 0x212   :  { %v775_v22 = vadd.f32 %v4193_v47, %v770_v16  ;;  %v3417_v24 = vpop.f32.mrb[27].mxu1 }
 0x213   :  { %3812 = vrcp.f32 %v605_v20 }
 0x214   :  { %3814 = vtanh.f32 %v775_v22  ;;  %3519 = vmatmul.mubr.msk.bf16.vlgmr.msra.gmra.mrb[52].mxu0 %vm126_vm2, %v3106_v5 }
 0x215   :  { %3531 = vmatpush3.bf16.msra.mxu0 %v4109_v13  ;;  %3532 = vmatprep.mubr.msk.bf16.mxu0 %vm4008_vm0, %v4007_v0 }
 0x216   :  { %3544 = vmatprep.subr.bf16.mxu0 %v4007_v0 }
 0x217   :  { %v811_v25 = vpop.f32.mrb[28].mxu1 }
 0x218   :  { %v3811_v26 = vpop.eup %3810  ;;  %v852_v28 = vadd.f32 %v851_v46, %v811_v25  ;;  %v3430_v29 = vpop.f32.mrb[29].mxu1 }
 0x219   :  { %v692_v30 = vadd.f32 1.0, %v3811_v26  ;;  %v814_v31 = vpop.f32.mrb[30].mxu1 }
 0x21a   :  { %v857_v32 = vadd.f32 %v4199_v60, %v852_v28  ;;  %v3431_v33 = vpop.f32.mrb[31].mxu1 }
 0x21b   :  { %3816 = vrcp.f32 %v692_v30 }
 0x21c   :  { %v3093_v34 = vmul.f32 -1.442695, %v857_v32  ;;  %3533 = vmatmul.mubr.msk.bf16.vlgmr.msra.gmra.mrb[56].mxu0 %vm126_vm2, %v3106_v5 }
 0x21d   :  { %v3813_v36 = vpop.eup %3812  ;;  %3545 = vmatpush3.bf16.msra.mxu0 %v4130_v17  ;;  %3546 = vmatprep.mubr.msk.bf16.mxu0 %vm4008_vm0, %v4007_v0 }
 0x21e   :  { %v3815_v37 = vpop.eup %3814  ;;  %3818 = vpow2.f32 %v3093_v34  ;;  %3558 = vmatprep.subr.bf16.mxu0 %v4007_v0 }
 0x21f   :  { %v865_v38 = vmul.f32 %v3815_v37, %v3813_v36 }
 0x224   :  { %3547 = vmatmul.mubr.msk.bf16.vlgmr.msra.gmra.mrb[60].mxu0 %vm126_vm2, %v3106_v5 }
 0x225   :  { %v3817_v39 = vpop.eup %3816  ;;  %3559 = vmatpush3.bf16.msra.mxu0 %v4069_v3  ;;  %3560 = vmatprep.mubr.msk.bf16.mxu0 %vm4008_vm0, %v4007_v0 }
 0x226   :  { %v864_v40 = vmul.f32 %v3817_v39, %v4202_v27  ;;  %v954_v27 = vpop.f32.mrb[32].mxu0  ;;  %3572 = vmatprep.subr.bf16.mxu0 %v4007_v0 }
 0x227   :  { %v3450_v49 = vpop.f32.mrb[33].mxu0 }
 0x228   :  { %v3819_v41 = vpop.eup %3818  ;;  %v4262_v42 = vadd.f32 %v865_v38, %v864_v40  ;;  %v957_v50 = vpop.f32.mrb[34].mxu0 }
 0x229   :  { %v861_v43 = vadd.f32 1.0, %v3819_v41  ;;  %v3451_v51 = vpop.f32.mrb[35].mxu0 }
 0x22a   :  { %3820 = vtanh.f32 %v4262_v42  ;;  %v1041_v52 = vpop.f32.mrb[36].mxu0 }
 0x22b   :  { %3822 = vrcp.f32 %v861_v43  ;;  %v3464_v53 = vpop.f32.mrb[37].mxu0 }
 0x22c   :  { %v1044_v54 = vpop.f32.mrb[38].mxu0 }
 0x22d   :  { %v3465_v55 = vpop.f32.mrb[39].mxu0 }
 0x22e   :  { %v1128_v56 = vpop.f32.mrb[40].mxu0 }
 0x22f   :  { %v3478_v57 = vpop.f32.mrb[41].mxu0 }
 0x230   :  { %v1131_v58 = vpop.f32.mrb[42].mxu0 }
 0x231   :  { %v3479_v59 = vpop.f32.mrb[43].mxu0 }
 0x232   :  { %v1210_v61 = vpop.f32.mrb[44].mxu0 }
 0x233   :  { %v3492_v62 = vpop.f32.mrb[45].mxu0 }
 0x234   :  { %v3821_v44 = vpop.eup %3820  ;;  %v1213_v63 = vpop.f32.mrb[46].mxu0 }
 0x235   :  { %v3823_v45 = vpop.eup %3822  ;;  %v3493_v2 = vpop.f32.mrb[47].mxu0 }
 0x236   :  { %v868_v46 = vmul.f32 %v3823_v45, %v3821_v44 }
 0x238   :  { %870 = vst.msk [vmem:[#allocation5 + $0x8] sm:$0xff] %vm82_vm3, %v868_v46  ;;  %v873_v48 = vpack.c.bf16 %v868_v46, %v868_v46 }
 0x23a   :  { %3443 = vmatmul.mubr.msk.bf16.vlgmr.msra.gmra.mrb[32].mxu1 %vm82_vm3, %v873_v48 }
 0x23b   :  { %3453 = vmatpush3.bf16.msra.mxu1 %v4078_v6  ;;  %3456 = vmatprep.mubr.msk.bf16.mxu1 %vm4008_vm0, %v4007_v0 }
 0x23c   :  { %3454 = vmatprep.subr.bf16.mxu1 %v4007_v0 }
 0x23f   :  { %3455 = vmatpush3.bf16.msra.mxu1 %v4091_v9 }
 0x240   :  { %3466 = vmatprep.subr.bf16.mxu1 %v4007_v0 }
 0x242   :  { %3457 = vmatmul.mubr.msk.bf16.vlgmr.msra.gmra.mrb[36].mxu1 %vm82_vm3, %v873_v48 }
 0x243   :  { %3467 = vmatpush3.bf16.msra.mxu1 %v4100_v11  ;;  %3470 = vmatprep.mubr.msk.bf16.mxu1 %vm4008_vm0, %v4007_v0 }
 0x244   :  { %3468 = vmatprep.subr.bf16.mxu1 %v4007_v0 }
 0x247   :  { %3469 = vmatpush3.bf16.msra.mxu1 %v4111_v14 }
 0x248   :  { %3480 = vmatprep.subr.bf16.mxu1 %v4007_v0 }
 0x24a   :  { %3471 = vmatmul.mubr.msk.bf16.vlgmr.msra.gmra.mrb[40].mxu1 %vm82_vm3, %v873_v48 }
 0x24b   :  { %3481 = vmatpush3.bf16.msra.mxu1 %v4121_v15  ;;  %3484 = vmatprep.mubr.msk.bf16.mxu1 %vm4008_vm0, %v4007_v0 }
 0x24c   :  { %3482 = vmatprep.subr.bf16.mxu1 %v4007_v0 }
 0x24f   :  { %3483 = vmatpush3.bf16.msra.mxu1 %v4132_v18 }
 0x250   :  { %3494 = vmatprep.subr.bf16.mxu1 %v4007_v0 }
 0x252   :  { %3485 = vmatmul.mubr.msk.bf16.vlgmr.msra.gmra.mrb[44].mxu1 %vm82_vm3, %v873_v48 }
 0x253   :  { %3495 = vmatpush3.bf16.msra.mxu1 %v4062_v1  ;;  %3498 = vmatprep.mubr.msk.bf16.mxu1 %vm4008_vm0, %v4007_v0 }
 0x254   :  { %3496 = vmatprep.subr.bf16.mxu1 %v4007_v0 }
 0x257   :  { %3497 = vmatpush3.bf16.msra.mxu1 %v4071_v4 }
 0x258   :  { %3508 = vmatprep.subr.bf16.mxu1 %v4007_v0 }
 0x30d   :  { %v911_v7 = vpop.f32.mrb[32].mxu1 }
 0x30e   :  { %v955_v10 = vadd.f32 %v954_v27, %v911_v7  ;;  %v3444_v12 = vpop.f32.mrb[33].mxu1 }
 0x30f   :  { %v914_v16 = vpop.f32.mrb[34].mxu1 }
 0x310   :  { %v960_v19 = vadd.f32 %v4181_v23, %v955_v10  ;;  %v3445_v20 = vpop.f32.mrb[35].mxu1 }
 0x312   :  { %v3097_v21 = vmul.f32 -1.442695, %v960_v19 }
 0x314   :  { %3824 = vpow2.f32 %v3097_v21 }
 0x315   :  { %v1001_v22 = vpop.f32.mrb[36].mxu1 }
 0x316   :  { %v1042_v24 = vadd.f32 %v1041_v52, %v1001_v22  ;;  %v3458_v25 = vpop.f32.mrb[37].mxu1 }
 0x317   :  { %v1004_v26 = vpop.f32.mrb[38].mxu1 }
 0x318   :  { %v1047_v28 = vadd.f32 %v4187_v35, %v1042_v24  ;;  %v3459_v29 = vpop.f32.mrb[39].mxu1 }
 0x31a   :  { %v3100_v30 = vmul.f32 -1.442695, %v1047_v28 }
 0x31c   :  { %3826 = vpow2.f32 %v3100_v30 }
 0x31d   :  { %v1088_v31 = vpop.f32.mrb[40].mxu1 }
 0x31e   :  { %v3825_v32 = vpop.eup %3824  ;;  %v1129_v33 = vadd.f32 %v1128_v56, %v1088_v31  ;;  %v3472_v34 = vpop.f32.mrb[41].mxu1 }
 0x31f   :  { %v964_v36 = vadd.f32 1.0, %v3825_v32  ;;  %v1091_v37 = vpop.f32.mrb[42].mxu1 }
 0x320   :  { %v1134_v38 = vadd.f32 %v4193_v47, %v1129_v33  ;;  %v3473_v39 = vpop.f32.mrb[43].mxu1 }
 0x321   :  { %3828 = vrcp.f32 %v964_v36 }
 0x322   :  { %3830 = vtanh.f32 %v1134_v38 }
 0x325   :  { %v1170_v40 = vpop.f32.mrb[44].mxu1 }
 0x326   :  { %v3827_v41 = vpop.eup %3826  ;;  %v1211_v43 = vadd.f32 %v1210_v61, %v1170_v40  ;;  %v3486_v44 = vpop.f32.mrb[45].mxu1 }
 0x327   :  { %v1051_v45 = vadd.f32 1.0, %v3827_v41  ;;  %v1173_v46 = vpop.f32.mrb[46].mxu1 }
 0x328   :  { %v1216_v48 = vadd.f32 %v4199_v60, %v1211_v43  ;;  %v3487_v27 = vpop.f32.mrb[47].mxu1 }
 0x329   :  { %3832 = vrcp.f32 %v1051_v45 }
 0x32a   :  { %v3105_v49 = vmul.f32 -1.442695, %v1216_v48 }
 0x32b   :  { %v3829_v50 = vpop.eup %3828 }
 0x32c   :  { %v3831_v51 = vpop.eup %3830  ;;  %3834 = vpow2.f32 %v3105_v49 }
 0x32d   :  { %v1224_v52 = vmul.f32 %v3831_v51, %v3829_v50 }
 0x333   :  { %v3833_v53 = vpop.eup %3832 }
 0x334   :  { %v1223_v54 = vmul.f32 %v3833_v53, %v4262_v42  ;;  %v1313_v42 = vpop.f32.mrb[48].mxu0 }
 0x335   :  { %v3506_v63 = vpop.f32.mrb[49].mxu0 }
 0x336   :  { %v3835_v55 = vpop.eup %3834  ;;  %v4322_v56 = vadd.f32 %v1224_v52, %v1223_v54  ;;  %v1316_v2 = vpop.f32.mrb[50].mxu0 }
 0x337   :  { %v1220_v57 = vadd.f32 1.0, %v3835_v55  ;;  %v3507_v5 = vpop.f32.mrb[51].mxu0 }
 0x338   :  { %3836 = vtanh.f32 %v4322_v56  ;;  %v1400_v7 = vpop.f32.mrb[52].mxu0 }
 0x339   :  { %3838 = vrcp.f32 %v1220_v57  ;;  %v3520_v10 = vpop.f32.mrb[53].mxu0 }
 0x33a   :  { %v1403_v12 = vpop.f32.mrb[54].mxu0 }
 0x33b   :  { %v3521_v16 = vpop.f32.mrb[55].mxu0 }
 0x33c   :  { %v1487_v19 = vpop.f32.mrb[56].mxu0 }
 0x33d   :  { %v3534_v20 = vpop.f32.mrb[57].mxu0 }
 0x342   :  { %v3837_v58 = vpop.eup %3836 }
 0x343   :  { %v3839_v59 = vpop.eup %3838 }
 0x344   :  { %v1227_v61 = vmul.f32 %v3839_v59, %v3837_v58 }
 0x346   :  { %1229 = vst.msk [vmem:[#allocation5 + $0x10] sm:$0xff] %vm82_vm3, %v1227_v61  ;;  %v1232_v62 = vpack.c.bf16 %v1227_v61, %v1227_v61 }
 0x348   :  { %3499 = vmatmul.mubr.msk.bf16.vlgmr.msra.gmra.mrb[48].mxu1 %vm82_vm3, %v1232_v62 }
 0x349   :  { %3509 = vmatpush3.bf16.msra.mxu1 %v4078_v6  ;;  %3512 = vmatprep.mubr.msk.bf16.mxu1 %vm4008_vm0, %v4007_v0 }
 0x34a   :  { %3510 = vmatprep.subr.bf16.mxu1 %v4007_v0 }
 0x34d   :  { %3511 = vmatpush3.bf16.msra.mxu1 %v4091_v9 }
 0x34e   :  { %3522 = vmatprep.subr.bf16.mxu1 %v4007_v0 }
 0x350   :  { %3513 = vmatmul.mubr.msk.bf16.vlgmr.msra.gmra.mrb[52].mxu1 %vm82_vm3, %v1232_v62 }
 0x351   :  { %3523 = vmatpush3.bf16.msra.mxu1 %v4100_v11  ;;  %3526 = vmatprep.mubr.msk.bf16.mxu1 %vm4008_vm0, %v4007_v0 }
 0x352   :  { %3524 = vmatprep.subr.bf16.mxu1 %v4007_v0 }
 0x355   :  { %3525 = vmatpush3.bf16.msra.mxu1 %v4111_v14 }
 0x356   :  { %3536 = vmatprep.subr.bf16.mxu1 %v4007_v0 }
 0x358   :  { %3527 = vmatmul.mubr.msk.bf16.vlgmr.msra.gmra.mrb[56].mxu1 %vm82_vm3, %v1232_v62 }
 0x359   :  { %3537 = vmatpush3.bf16.msra.mxu1 %v4121_v15  ;;  %3540 = vmatprep.mubr.msk.bf16.mxu1 %vm4008_vm0, %v4007_v0 }
 0x35a   :  { %3538 = vmatprep.subr.bf16.mxu1 %v4007_v0 }
 0x35d   :  { %3539 = vmatpush3.bf16.msra.mxu1 %v4132_v18 }
 0x35e   :  { %3550 = vmatprep.subr.bf16.mxu1 %v4007_v0 }
 0x360   :  { %3541 = vmatmul.mubr.msk.bf16.vlgmr.msra.gmra.mrb[60].mxu1 %vm82_vm3, %v1232_v62 }
 0x361   :  { %3551 = vmatpush3.bf16.msra.mxu1 %v4062_v1  ;;  %3554 = vmatprep.mubr.msk.bf16.mxu1 %vm4008_vm0, %v4007_v0  ;;  %v1490_v1 = vpop.f32.mrb[58].mxu0 }
 0x362   :  { %3552 = vmatprep.subr.bf16.mxu1 %v4007_v0  ;;  %v3535_v21 = vpop.f32.mrb[59].mxu0 }
 0x363   :  { %v1569_v22 = vpop.f32.mrb[60].mxu0 }
 0x364   :  { %v3548_v24 = vpop.f32.mrb[61].mxu0 }
 0x365   :  { %3553 = vmatpush3.bf16.msra.mxu1 %v4071_v4  ;;  %v1572_v25 = vpop.f32.mrb[62].mxu0  ;;  %v3118_v4 = vld [vmem:[%s4649_s0 + $0x10] sm:$0xf] }
 0x366   :  { %3564 = vmatprep.subr.bf16.mxu1 %v4007_v0  ;;  %v3549_v26 = vpop.f32.mrb[63].mxu0  ;;  %3561 = vmatmul.mubr.msk.bf16.vlgmr.msra.gmra.mrb[64].mxu0 %vm126_vm2, %v3118_v4 }
 0x367   :  { %3573 = vmatpush3.bf16.msra.mxu0 %v4089_v8  ;;  %3574 = vmatprep.mubr.msk.bf16.mxu0 %vm4008_vm0, %v4007_v0 }
 0x368   :  { %3586 = vmatprep.subr.bf16.mxu0 %v4007_v0 }
 0x36e   :  { %3575 = vmatmul.mubr.msk.bf16.vlgmr.msra.gmra.mrb[68].mxu0 %vm126_vm2, %v3118_v4 }
 0x36f   :  { %3587 = vmatpush3.bf16.msra.mxu0 %v4109_v13  ;;  %3588 = vmatprep.mubr.msk.bf16.mxu0 %vm4008_vm0, %v4007_v0 }
 0x370   :  { %3600 = vmatprep.subr.bf16.mxu0 %v4007_v0 }
 0x376   :  { %3589 = vmatmul.mubr.msk.bf16.vlgmr.msra.gmra.mrb[72].mxu0 %vm126_vm2, %v3118_v4 }
 0x377   :  { %3601 = vmatpush3.bf16.msra.mxu0 %v4130_v17  ;;  %3602 = vmatprep.mubr.msk.bf16.mxu0 %vm4008_vm0, %v4007_v0 }
 0x378   :  { %3614 = vmatprep.subr.bf16.mxu0 %v4007_v0 }
 0x37e   :  { %3603 = vmatmul.mubr.msk.bf16.vlgmr.msra.gmra.mrb[76].mxu0 %vm126_vm2, %v3118_v4 }
 0x37f   :  { %3615 = vmatpush3.bf16.msra.mxu0 %v4069_v3  ;;  %3616 = vmatprep.mubr.msk.bf16.mxu0 %vm4008_vm0, %v4007_v0 }
 0x380   :  { %3628 = vmatprep.subr.bf16.mxu0 %v4007_v0 }
 0x41b   :  { %v1270_v28 = vpop.f32.mrb[48].mxu1 }
 0x41c   :  { %v1314_v29 = vadd.f32 %v1313_v42, %v1270_v28  ;;  %v3500_v30 = vpop.f32.mrb[49].mxu1 }
 0x41d   :  { %v1273_v31 = vpop.f32.mrb[50].mxu1 }
 0x41e   :  { %v1319_v32 = vadd.f32 %v4181_v23, %v1314_v29  ;;  %v3501_v33 = vpop.f32.mrb[51].mxu1 }
 0x420   :  { %v3109_v34 = vmul.f32 -1.442695, %v1319_v32 }
 0x422   :  { %3840 = vpow2.f32 %v3109_v34  ;;  %v3130_v34 = vld [vmem:[%s4649_s0 + $0x14] sm:$0xf] }
 0x423   :  { %v1360_v36 = vpop.f32.mrb[52].mxu1  ;;  %3617 = vmatmul.mubr.msk.bf16.vlgmr.msra.gmra.mrb[80].mxu0 %vm126_vm2, %v3130_v34 }
 0x424   :  { %v1401_v37 = vadd.f32 %v1400_v7, %v1360_v36  ;;  %v3514_v38 = vpop.f32.mrb[53].mxu1  ;;  %3629 = vmatpush3.bf16.msra.mxu0 %v4089_v8  ;;  %3630 = vmatprep.mubr.msk.bf16.mxu0 %vm4008_vm0, %v4007_v0 }
 0x425   :  { %v1363_v39 = vpop.f32.mrb[54].mxu1  ;;  %3642 = vmatprep.subr.bf16.mxu0 %v4007_v0 }
 0x426   :  { %v1406_v40 = vadd.f32 %v4187_v35, %v1401_v37  ;;  %v3515_v41 = vpop.f32.mrb[55].mxu1 }
 0x428   :  { %v3112_v43 = vmul.f32 -1.442695, %v1406_v40 }
 0x42a   :  { %3842 = vpow2.f32 %v3112_v43 }
 0x42b   :  { %v1447_v44 = vpop.f32.mrb[56].mxu1  ;;  %3631 = vmatmul.mubr.msk.bf16.vlgmr.msra.gmra.mrb[84].mxu0 %vm126_vm2, %v3130_v34 }
 0x42c   :  { %v3841_v45 = vpop.eup %3840  ;;  %v1488_v46 = vadd.f32 %v1487_v19, %v1447_v44  ;;  %v3528_v48 = vpop.f32.mrb[57].mxu1  ;;  %3643 = vmatpush3.bf16.msra.mxu0 %v4109_v13  ;;  %3644 = vmatprep.mubr.msk.bf16.mxu0 %vm4008_vm0, %v4007_v0 }
 0x42d   :  { %v1323_v27 = vadd.f32 1.0, %v3841_v45  ;;  %v1450_v49 = vpop.f32.mrb[58].mxu1  ;;  %3656 = vmatprep.subr.bf16.mxu0 %v4007_v0 }
 0x42e   :  { %v1493_v50 = vadd.f32 %v4193_v47, %v1488_v46  ;;  %v3529_v51 = vpop.f32.mrb[59].mxu1 }
 0x42f   :  { %3844 = vrcp.f32 %v1323_v27 }
 0x430   :  { %3846 = vtanh.f32 %v1493_v50 }
 0x433   :  { %v1529_v52 = vpop.f32.mrb[60].mxu1  ;;  %3645 = vmatmul.mubr.msk.bf16.vlgmr.msra.gmra.mrb[88].mxu0 %vm126_vm2, %v3130_v34 }
 0x434   :  { %v3843_v53 = vpop.eup %3842  ;;  %v1570_v54 = vadd.f32 %v1569_v22, %v1529_v52  ;;  %v3542_v55 = vpop.f32.mrb[61].mxu1  ;;  %3657 = vmatpush3.bf16.msra.mxu0 %v4130_v17  ;;  %3658 = vmatprep.mubr.msk.bf16.mxu0 %vm4008_vm0, %v4007_v0 }
 0x435   :  { %v1410_v57 = vadd.f32 1.0, %v3843_v53  ;;  %v1532_v58 = vpop.f32.mrb[62].mxu1  ;;  %3670 = vmatprep.subr.bf16.mxu0 %v4007_v0 }
 0x436   :  { %v1575_v59 = vadd.f32 %v4199_v60, %v1570_v54  ;;  %v3543_v61 = vpop.f32.mrb[63].mxu1 }
 0x437   :  { %3848 = vrcp.f32 %v1410_v57 }
 0x438   :  { %v3117_v62 = vmul.f32 -1.442695, %v1575_v59 }
 0x439   :  { %v3845_v42 = vpop.eup %3844 }
 0x43a   :  { %v3847_v63 = vpop.eup %3846  ;;  %3850 = vpow2.f32 %v3117_v62 }
 0x43b   :  { %v1583_v2 = vmul.f32 %v3847_v63, %v3845_v42  ;;  %3659 = vmatmul.mubr.msk.bf16.vlgmr.msra.gmra.mrb[92].mxu0 %vm126_vm2, %v3130_v34 }
 0x43c   :  { %3671 = vmatpush3.bf16.msra.mxu0 %v4069_v3  ;;  %3672 = vmatprep.mubr.msk.bf16.mxu0 %vm4008_vm0, %v4007_v0 }
 0x43d   :  { %3684 = vmatprep.subr.bf16.mxu0 %v4007_v0 }
 0x441   :  { %v3849_v5 = vpop.eup %3848 }
 0x442   :  { %v1582_v7 = vmul.f32 %v3849_v5, %v4322_v56 }
 0x444   :  { %v3851_v10 = vpop.eup %3850  ;;  %v4382_v12 = vadd.f32 %v1583_v2, %v1582_v7 }
 0x445   :  { %v1579_v16 = vadd.f32 1.0, %v3851_v10 }
 0x446   :  { %3852 = vtanh.f32 %v4382_v12 }
 0x447   :  { %3854 = vrcp.f32 %v1579_v16 }
 0x450   :  { %v3853_v19 = vpop.eup %3852 }
 0x451   :  { %v3855_v20 = vpop.eup %3854 }
 0x452   :  { %v1586_v1 = vmul.f32 %v3855_v20, %v3853_v19 }
 0x454   :  { %1588 = vst.msk [vmem:[#allocation5 + $0x18] sm:$0xff] %vm82_vm3, %v1586_v1  ;;  %v1591_v21 = vpack.c.bf16 %v1586_v1, %v1586_v1 }
 0x456   :  { %3555 = vmatmul.mubr.msk.bf16.vlgmr.msra.gmra.mrb[64].mxu1 %vm82_vm3, %v1591_v21 }
 0x457   :  { %3565 = vmatpush3.bf16.msra.mxu1 %v4078_v6  ;;  %3568 = vmatprep.mubr.msk.bf16.mxu1 %vm4008_vm0, %v4007_v0  ;;  %v4408_v6 = vld [vmem:[#allocation2] sm:$0xff]  }
 0x458   :  { %3566 = vmatprep.subr.bf16.mxu1 %v4007_v0 }
 0x45b   :  { %3567 = vmatpush3.bf16.msra.mxu1 %v4091_v9  ;;  %v4414_v9 = vld [vmem:[#allocation2 + $0x8] sm:$0xff]  }
 0x45c   :  { %3578 = vmatprep.subr.bf16.mxu1 %v4007_v0 }
 0x45e   :  { %3569 = vmatmul.mubr.msk.bf16.vlgmr.msra.gmra.mrb[68].mxu1 %vm82_vm3, %v1591_v21 }
 0x45f   :  { %3579 = vmatpush3.bf16.msra.mxu1 %v4100_v11  ;;  %3582 = vmatprep.mubr.msk.bf16.mxu1 %vm4008_vm0, %v4007_v0  ;;  %v1672_v11 = vpop.f32.mrb[64].mxu0 }
 0x460   :  { %3580 = vmatprep.subr.bf16.mxu1 %v4007_v0 }
 0x463   :  { %3581 = vmatpush3.bf16.msra.mxu1 %v4111_v14  ;;  %v3562_v14 = vpop.f32.mrb[65].mxu0 }
 0x464   :  { %3592 = vmatprep.subr.bf16.mxu1 %v4007_v0 }
 0x466   :  { %3583 = vmatmul.mubr.msk.bf16.vlgmr.msra.gmra.mrb[72].mxu1 %vm82_vm3, %v1591_v21 }
 0x467   :  { %3593 = vmatpush3.bf16.msra.mxu1 %v4121_v15  ;;  %3596 = vmatprep.mubr.msk.bf16.mxu1 %vm4008_vm0, %v4007_v0  ;;  %v1675_v15 = vpop.f32.mrb[66].mxu0 }
 0x468   :  { %3594 = vmatprep.subr.bf16.mxu1 %v4007_v0 }
 0x46b   :  { %3595 = vmatpush3.bf16.msra.mxu1 %v4132_v18  ;;  %v3563_v18 = vpop.f32.mrb[67].mxu0 }
 0x46c   :  { %3606 = vmatprep.subr.bf16.mxu1 %v4007_v0  ;;  %v1759_v56 = vpop.f32.mrb[68].mxu0 }
 0x46d   :  { %v3576_v22 = vpop.f32.mrb[69].mxu0 }
 0x46e   :  { %3597 = vmatmul.mubr.msk.bf16.vlgmr.msra.gmra.mrb[76].mxu1 %vm82_vm3, %v1591_v21  ;;  %v1762_v24 = vpop.f32.mrb[70].mxu0  ;;  %v4462_v22 = vld [vmem:[#allocation2 + $0x20] sm:$0xff]  }
 0x46f   :  { %3607 = vmatpush3.bf16.msra.mxu1 %v4408_v6  ;;  %3610 = vmatprep.mubr.msk.bf16.mxu1 %vm4008_vm0, %v4007_v0  ;;  %v3577_v25 = vpop.f32.mrb[71].mxu0  ;;  %v4468_v24 = vld [vmem:[#allocation2 + $0x28] sm:$0xff]  }
 0x470   :  { %3608 = vmatprep.subr.bf16.mxu1 %v4007_v0  ;;  %v1846_v26 = vpop.f32.mrb[72].mxu0  ;;  %v4473_v25 = vld [vmem:[#allocation2 + $0x30] sm:$0xff]  }
 0x471   :  { %v3590_v4 = vpop.f32.mrb[73].mxu0 }
 0x472   :  { %v1849_v28 = vpop.f32.mrb[74].mxu0 }
 0x473   :  { %3609 = vmatpush3.bf16.msra.mxu1 %v4414_v9  ;;  %v3591_v29 = vpop.f32.mrb[75].mxu0 }
 0x474   :  { %3620 = vmatprep.subr.bf16.mxu1 %v4007_v0  ;;  %v1928_v30 = vpop.f32.mrb[76].mxu0 }
 0x475   :  { %v3604_v31 = vpop.f32.mrb[77].mxu0 }
 0x476   :  { %v1931_v32 = vpop.f32.mrb[78].mxu0 }
 0x477   :  { %v3605_v33 = vpop.f32.mrb[79].mxu0 }
 0x4f6   :  { %v2031_v4 = vpop.f32.mrb[80].mxu0 }
 0x4f7   :  { %v3618_v28 = vpop.f32.mrb[81].mxu0 }
 0x4f8   :  { %v2034_v29 = vpop.f32.mrb[82].mxu0 }
 0x529   :  { %v1629_v36 = vpop.f32.mrb[64].mxu1 }
 0x52a   :  { %v1673_v37 = vadd.f32 %v1672_v11, %v1629_v36  ;;  %v3556_v38 = vpop.f32.mrb[65].mxu1 }
 0x52b   :  { %v1632_v39 = vpop.f32.mrb[66].mxu1 }
 0x52c   :  { %v1678_v40 = vadd.f32 %v4181_v23, %v1673_v37  ;;  %v3557_v41 = vpop.f32.mrb[67].mxu1 }
 0x52e   :  { %v3121_v43 = vmul.f32 -1.442695, %v1678_v40 }
 0x530   :  { %3856 = vpow2.f32 %v3121_v43 }
 0x531   :  { %v1719_v44 = vpop.f32.mrb[68].mxu1 }
 0x532   :  { %v1760_v45 = vadd.f32 %v1759_v56, %v1719_v44  ;;  %v3570_v46 = vpop.f32.mrb[69].mxu1  ;;  %v4451_v56 = vld [vmem:[#allocation2 + $0x10] sm:$0xff]  }
 0x533   :  { %v1722_v48 = vpop.f32.mrb[70].mxu1 }
 0x534   :  { %v1765_v27 = vadd.f32 %v4187_v35, %v1760_v45  ;;  %v3571_v49 = vpop.f32.mrb[71].mxu1  ;;  %v3142_v45 = vld [vmem:[%s4649_s0 + $0x18] sm:$0xf] }
 0x535   :  { %3673 = vmatmul.mubr.msk.bf16.vlgmr.msra.gmra.mrb[96].mxu0 %vm126_vm2, %v3142_v45 }
 0x536   :  { %v3124_v50 = vmul.f32 -1.442695, %v1765_v27  ;;  %3685 = vmatpush3.bf16.msra.mxu0 %v4089_v8  ;;  %3686 = vmatprep.mubr.msk.bf16.mxu0 %vm4008_vm0, %v4007_v0 }
 0x537   :  { %3698 = vmatprep.subr.bf16.mxu0 %v4007_v0 }
 0x538   :  { %3858 = vpow2.f32 %v3124_v50  ;;  %v4516_v50 = vld [vmem:[%s4652_s3] ss:$0 sm:$0xff] }
 0x539   :  { %v1806_v51 = vpop.f32.mrb[72].mxu1 }
 0x53a   :  { %v3857_v52 = vpop.eup %3856  ;;  %v1847_v53 = vadd.f32 %v1846_v26, %v1806_v51  ;;  %v3584_v54 = vpop.f32.mrb[73].mxu1  ;;  %v4479_v26 = vld [vmem:[#allocation2 + $0x38] sm:$0xff]  }
 0x53b   :  { %v1682_v55 = vadd.f32 1.0, %v3857_v52  ;;  %v1809_v57 = vpop.f32.mrb[74].mxu1 }
 0x53c   :  { %v1852_v23 = vadd.f32 %v4193_v47, %v1847_v53  ;;  %v3585_v58 = vpop.f32.mrb[75].mxu1 }
 0x53d   :  { %3860 = vrcp.f32 %v1682_v55  ;;  %3687 = vmatmul.mubr.msk.bf16.vlgmr.msra.gmra.mrb[100].mxu0 %vm126_vm2, %v3142_v45 }
 0x53e   :  { %3862 = vtanh.f32 %v1852_v23  ;;  %3699 = vmatpush3.bf16.msra.mxu0 %v4109_v13  ;;  %3700 = vmatprep.mubr.msk.bf16.mxu0 %vm4008_vm0, %v4007_v0  ;;  %v4522_v23 = vld [vmem:[%s4652_s3 + $0x1] ss:$0 sm:$0xff] }
 0x53f   :  { %3712 = vmatprep.subr.bf16.mxu0 %v4007_v0 }
 0x541   :  { %v1888_v59 = vpop.f32.mrb[76].mxu1 }
 0x542   :  { %v3859_v61 = vpop.eup %3858  ;;  %v1929_v62 = vadd.f32 %v1928_v30, %v1888_v59  ;;  %v3598_v42 = vpop.f32.mrb[77].mxu1 }
 0x543   :  { %v1769_v63 = vadd.f32 1.0, %v3859_v61  ;;  %v1891_v35 = vpop.f32.mrb[78].mxu1  ;;  %v3619_v30 = vpop.f32.mrb[83].mxu0 }
 0x544   :  { %v1934_v2 = vadd.f32 %v4199_v60, %v1929_v62  ;;  %v3599_v5 = vpop.f32.mrb[79].mxu1  ;;  %v2118_v31 = vpop.f32.mrb[84].mxu0 }
 0x545   :  { %3864 = vrcp.f32 %v1769_v63  ;;  %v3632_v32 = vpop.f32.mrb[85].mxu0  ;;  %3701 = vmatmul.mubr.msk.bf16.vlgmr.msra.gmra.mrb[104].mxu0 %vm126_vm2, %v3142_v45 }
 0x546   :  { %v3129_v7 = vmul.f32 -1.442695, %v1934_v2  ;;  %v2121_v33 = vpop.f32.mrb[86].mxu0  ;;  %3713 = vmatpush3.bf16.msra.mxu0 %v4130_v17  ;;  %3714 = vmatprep.mubr.msk.bf16.mxu0 %vm4008_vm0, %v4007_v0 }
 0x547   :  { %v3861_v10 = vpop.eup %3860  ;;  %v3633_v34 = vpop.f32.mrb[87].mxu0  ;;  %3726 = vmatprep.subr.bf16.mxu0 %v4007_v0 }
 0x548   :  { %v3863_v16 = vpop.eup %3862  ;;  %3866 = vpow2.f32 %v3129_v7  ;;  %v2205_v36 = vpop.f32.mrb[88].mxu0  ;;  %v4528_v7 = vld [vmem:[%s4652_s3 + $0x2] ss:$0 sm:$0xff] }
 0x549   :  { %v1942_v19 = vmul.f32 %v3863_v16, %v3861_v10  ;;  %v3646_v37 = vpop.f32.mrb[89].mxu0 }
 0x54a   :  { %v2208_v38 = vpop.f32.mrb[90].mxu0 }
 0x54b   :  { %v3647_v39 = vpop.f32.mrb[91].mxu0 }
 0x54c   :  { %v2287_v40 = vpop.f32.mrb[92].mxu0 }
 0x54d   :  { %v3660_v41 = vpop.f32.mrb[93].mxu0  ;;  %3715 = vmatmul.mubr.msk.bf16.vlgmr.msra.gmra.mrb[108].mxu0 %vm126_vm2, %v3142_v45 }
 0x54e   :  { %v2290_v43 = vpop.f32.mrb[94].mxu0  ;;  %3727 = vmatpush3.bf16.msra.mxu0 %v4069_v3  ;;  %3728 = vmatprep.mubr.msk.bf16.mxu0 %vm4008_vm0, %v4007_v0 }
 0x54f   :  { %v3865_v20 = vpop.eup %3864  ;;  %v3661_v44 = vpop.f32.mrb[95].mxu0  ;;  %3740 = vmatprep.subr.bf16.mxu0 %v4007_v0 }
 0x550   :  { %v1941_v47 = vmul.f32 %v3865_v20, %v4382_v12  ;;  %v4457_v12 = vld [vmem:[#allocation2 + $0x18] sm:$0xff]  }
 0x552   :  { %v3867_v1 = vpop.eup %3866  ;;  %v4446_v21 = vadd.f32 %v1942_v19, %v1941_v47 }
 0x553   :  { %v1938_v11 = vadd.f32 1.0, %v3867_v1 }
 0x554   :  { %3868 = vtanh.f32 %v4446_v21 }
 0x555   :  { %3870 = vrcp.f32 %v1938_v11 }
 0x55e   :  { %v3869_v14 = vpop.eup %3868 }
 0x55f   :  { %v3871_v15 = vpop.eup %3870 }
 0x560   :  { %v1945_v60 = vmul.f32 %v3871_v15, %v3869_v14  ;;  %v4534_v15 = vld [vmem:[%s4652_s3 + $0x3] ss:$0 sm:$0xff] }
 0x562   :  { %1947 = vst.msk [vmem:[#allocation5 + $0x20] sm:$0xff] %vm82_vm3, %v1945_v60  ;;  %v1950_v18 = vpack.c.bf16 %v1945_v60, %v1945_v60 }
 0x564   :  { %3611 = vmatmul.mubr.msk.bf16.vlgmr.msra.gmra.mrb[80].mxu1 %vm82_vm3, %v1950_v18 }
 0x565   :  { %3621 = vmatpush3.bf16.msra.mxu1 %v4451_v56  ;;  %3624 = vmatprep.mubr.msk.bf16.mxu1 %vm4008_vm0, %v4007_v0 }
 0x566   :  { %3622 = vmatprep.subr.bf16.mxu1 %v4007_v0 }
 0x569   :  { %3623 = vmatpush3.bf16.msra.mxu1 %v4457_v12 }
 0x56a   :  { %3634 = vmatprep.subr.bf16.mxu1 %v4007_v0 }
 0x56c   :  { %3625 = vmatmul.mubr.msk.bf16.vlgmr.msra.gmra.mrb[84].mxu1 %vm82_vm3, %v1950_v18 }
 0x56d   :  { %3635 = vmatpush3.bf16.msra.mxu1 %v4462_v22  ;;  %3638 = vmatprep.mubr.msk.bf16.mxu1 %vm4008_vm0, %v4007_v0 }
 0x56e   :  { %3636 = vmatprep.subr.bf16.mxu1 %v4007_v0 }
 0x571   :  { %3637 = vmatpush3.bf16.msra.mxu1 %v4468_v24 }
 0x572   :  { %3648 = vmatprep.subr.bf16.mxu1 %v4007_v0 }
 0x574   :  { %3639 = vmatmul.mubr.msk.bf16.vlgmr.msra.gmra.mrb[88].mxu1 %vm82_vm3, %v1950_v18 }
 0x575   :  { %3649 = vmatpush3.bf16.msra.mxu1 %v4473_v25  ;;  %3652 = vmatprep.mubr.msk.bf16.mxu1 %vm4008_vm0, %v4007_v0 }
 0x576   :  { %3650 = vmatprep.subr.bf16.mxu1 %v4007_v0 }
 0x579   :  { %3651 = vmatpush3.bf16.msra.mxu1 %v4479_v26 }
 0x57a   :  { %3662 = vmatprep.subr.bf16.mxu1 %v4007_v0 }
 0x57c   :  { %3653 = vmatmul.mubr.msk.bf16.vlgmr.msra.gmra.mrb[92].mxu1 %vm82_vm3, %v1950_v18 }
 0x57d   :  { %3663 = vmatpush3.bf16.msra.mxu1 %v4408_v6  ;;  %3666 = vmatprep.mubr.msk.bf16.mxu1 %vm4008_vm0, %v4007_v0 }
 0x57e   :  { %3664 = vmatprep.subr.bf16.mxu1 %v4007_v0 }
 0x581   :  { %3665 = vmatpush3.bf16.msra.mxu1 %v4414_v9 }
 0x582   :  { %3676 = vmatprep.subr.bf16.mxu1 %v4007_v0 }
 0x637   :  { %v1988_v46 = vpop.f32.mrb[80].mxu1 }
 0x638   :  { %v2032_v48 = vadd.f32 %v2031_v4, %v1988_v46  ;;  %v3612_v27 = vpop.f32.mrb[81].mxu1 }
 0x639   :  { %v1991_v49 = vpop.f32.mrb[82].mxu1 }
 0x63a   :  { %v2037_v51 = vadd.f32 %v4516_v50, %v2032_v48  ;;  %v3613_v52 = vpop.f32.mrb[83].mxu1 }
 0x63c   :  { %v3133_v53 = vmul.f32 -1.442695, %v2037_v51 }
 0x63e   :  { %3872 = vpow2.f32 %v3133_v53 }
 0x63f   :  { %v2078_v3 = vpop.f32.mrb[84].mxu1 }
 0x640   :  { %v2119_v54 = vadd.f32 %v2118_v31, %v2078_v3  ;;  %v3626_v55 = vpop.f32.mrb[85].mxu1 }
 0x641   :  { %v2081_v57 = vpop.f32.mrb[86].mxu1 }
 0x642   :  { %v2124_v58 = vadd.f32 %v4522_v23, %v2119_v54  ;;  %v3627_v59 = vpop.f32.mrb[87].mxu1 }
 0x644   :  { %v3136_v61 = vmul.f32 -1.442695, %v2124_v58 }
 0x646   :  { %3874 = vpow2.f32 %v3136_v61 }
 0x647   :  { %v2165_v62 = vpop.f32.mrb[88].mxu1 }
 0x648   :  { %v3873_v42 = vpop.eup %3872  ;;  %v2206_v63 = vadd.f32 %v2205_v36, %v2165_v62  ;;  %v3640_v35 = vpop.f32.mrb[89].mxu1 }
 0x649   :  { %v2041_v2 = vadd.f32 1.0, %v3873_v42  ;;  %v2168_v5 = vpop.f32.mrb[90].mxu1 }
 0x64a   :  { %v2211_v10 = vadd.f32 %v4528_v7, %v2206_v63  ;;  %v3641_v16 = vpop.f32.mrb[91].mxu1 }
 0x64b   :  { %3876 = vrcp.f32 %v2041_v2 }
 0x64c   :  { %3878 = vtanh.f32 %v2211_v10 }
 0x64f   :  { %v2247_v19 = vpop.f32.mrb[92].mxu1 }
 0x650   :  { %v3875_v20 = vpop.eup %3874  ;;  %v2288_v47 = vadd.f32 %v2287_v40, %v2247_v19  ;;  %v3654_v1 = vpop.f32.mrb[93].mxu1 }
 0x651   :  { %v2128_v11 = vadd.f32 1.0, %v3875_v20  ;;  %v2250_v14 = vpop.f32.mrb[94].mxu1 }
 0x652   :  { %v2293_v60 = vadd.f32 %v4534_v15, %v2288_v47  ;;  %v3655_v18 = vpop.f32.mrb[95].mxu1 }
 0x653   :  { %3880 = vrcp.f32 %v2128_v11 }
 0x654   :  { %v3141_v4 = vmul.f32 -1.442695, %v2293_v60 }
 0x655   :  { %v3877_v28 = vpop.eup %3876 }
 0x656   :  { %v3879_v29 = vpop.eup %3878  ;;  %3882 = vpow2.f32 %v3141_v4 }
 0x657   :  { %v2301_v30 = vmul.f32 %v3879_v29, %v3877_v28 }
 0x65d   :  { %v3881_v31 = vpop.eup %3880 }
 0x65e   :  { %v2300_v32 = vmul.f32 %v3881_v31, %v4446_v21  ;;  %v2390_v21 = vpop.f32.mrb[96].mxu0 }
 0x65f   :  { %v3674_v41 = vpop.f32.mrb[97].mxu0 }
 0x660   :  { %v3883_v33 = vpop.eup %3882  ;;  %v4538_v34 = vadd.f32 %v2301_v30, %v2300_v32  ;;  %v2393_v43 = vpop.f32.mrb[98].mxu0 }
 0x661   :  { %v2297_v36 = vadd.f32 1.0, %v3883_v33  ;;  %v3675_v44 = vpop.f32.mrb[99].mxu0 }
 0x662   :  { %3884 = vtanh.f32 %v4538_v34  ;;  %v2477_v45 = vpop.f32.mrb[100].mxu0 }
 0x663   :  { %3886 = vrcp.f32 %v2297_v36  ;;  %v3688_v46 = vpop.f32.mrb[101].mxu0 }
 0x664   :  { %v2480_v48 = vpop.f32.mrb[102].mxu0 }
 0x665   :  { %v3689_v27 = vpop.f32.mrb[103].mxu0 }
 0x666   :  { %v2564_v49 = vpop.f32.mrb[104].mxu0 }
 0x667   :  { %v3702_v51 = vpop.f32.mrb[105].mxu0 }
 0x66c   :  { %v3885_v37 = vpop.eup %3884 }
 0x66d   :  { %v3887_v38 = vpop.eup %3886 }
 0x66e   :  { %v2304_v39 = vmul.f32 %v3887_v38, %v3885_v37 }
 0x670   :  { %2306 = vst.msk [vmem:[#allocation5 + $0x28] sm:$0xff] %vm82_vm3, %v2304_v39  ;;  %v2309_v40 = vpack.c.bf16 %v2304_v39, %v2304_v39 }
 0x672   :  { %3667 = vmatmul.mubr.msk.bf16.vlgmr.msra.gmra.mrb[96].mxu1 %vm82_vm3, %v2309_v40 }
 0x673   :  { %3677 = vmatpush3.bf16.msra.mxu1 %v4451_v56  ;;  %3680 = vmatprep.mubr.msk.bf16.mxu1 %vm4008_vm0, %v4007_v0 }
 0x674   :  { %3678 = vmatprep.subr.bf16.mxu1 %v4007_v0 }
 0x677   :  { %3679 = vmatpush3.bf16.msra.mxu1 %v4457_v12 }
 0x678   :  { %3690 = vmatprep.subr.bf16.mxu1 %v4007_v0 }
 0x67a   :  { %3681 = vmatmul.mubr.msk.bf16.vlgmr.msra.gmra.mrb[100].mxu1 %vm82_vm3, %v2309_v40 }
 0x67b   :  { %3691 = vmatpush3.bf16.msra.mxu1 %v4462_v22  ;;  %3694 = vmatprep.mubr.msk.bf16.mxu1 %vm4008_vm0, %v4007_v0 }
 0x67c   :  { %3692 = vmatprep.subr.bf16.mxu1 %v4007_v0 }
 0x67f   :  { %3693 = vmatpush3.bf16.msra.mxu1 %v4468_v24 }
 0x680   :  { %3704 = vmatprep.subr.bf16.mxu1 %v4007_v0 }
 0x682   :  { %3695 = vmatmul.mubr.msk.bf16.vlgmr.msra.gmra.mrb[104].mxu1 %vm82_vm3, %v2309_v40 }
 0x683   :  { %3705 = vmatpush3.bf16.msra.mxu1 %v4473_v25  ;;  %3708 = vmatprep.mubr.msk.bf16.mxu1 %vm4008_vm0, %v4007_v0 }
 0x684   :  { %3706 = vmatprep.subr.bf16.mxu1 %v4007_v0 }
 0x687   :  { %3707 = vmatpush3.bf16.msra.mxu1 %v4479_v26 }
 0x688   :  { %3718 = vmatprep.subr.bf16.mxu1 %v4007_v0 }
 0x68a   :  { %3709 = vmatmul.mubr.msk.bf16.vlgmr.msra.gmra.mrb[108].mxu1 %vm82_vm3, %v2309_v40 }
 0x68b   :  { %3719 = vmatpush3.bf16.msra.mxu1 %v4408_v6  ;;  %3722 = vmatprep.mubr.msk.bf16.mxu1 %vm4008_vm0, %v4007_v0  ;;  %v2567_v6 = vpop.f32.mrb[106].mxu0 }
 0x68c   :  { %3720 = vmatprep.subr.bf16.mxu1 %v4007_v0  ;;  %v3703_v52 = vpop.f32.mrb[107].mxu0 }
 0x68d   :  { %v2646_v53 = vpop.f32.mrb[108].mxu0 }
 0x68e   :  { %v3716_v3 = vpop.f32.mrb[109].mxu0 }
 0x68f   :  { %3721 = vmatpush3.bf16.msra.mxu1 %v4414_v9  ;;  %v2649_v54 = vpop.f32.mrb[110].mxu0  ;;  %v3154_v9 = vld [vmem:[%s4649_s0 + $0x1c] sm:$0xf]  ;;  %s4010_s0 = smov [#allocation6]  }
 0x690   :  { %3732 = vmatprep.subr.bf16.mxu1 %v4007_v0  ;;  %v3717_v55 = vpop.f32.mrb[111].mxu0  ;;  %3729 = vmatmul.mubr.msk.bf16.vlgmr.msra.gmra.mrb[112].mxu0 %vm126_vm2, %v3154_v9  ;;  %s3044_s17 = sshll.u32 %s4010_s0, 4  ;;  %s3045_s17 = int_to_ptr.vmem [resolvable:$true] %s3044_s17 }
 0x691   :  { %3741 = vmatpush3.bf16.msra.mxu0 %v4089_v8  ;;  %3742 = vmatprep.mubr.msk.bf16.mxu0 %vm4008_vm0, %v4007_v0  ;;  %s3954_s18 = scalar_lea.vmem %s3045_s17, 128  ;;  %p3959_p9 = scmp.lt.s32.totalorder %s3045_s17, %s3045_s17 }
 0x692   :  { %3754 = vmatprep.subr.bf16.mxu0 %v4007_v0  ;;  %p3955_p8 = scmp.ne.s32.totalorder %s3045_s17, %s3954_s18  ;;  %p3960_p10 = scmp.lt.s32.totalorder %s3954_s18, %s3954_s18 }
 0x694   :  { %p3961_p11 = por %p3960_p10, %p3959_p9 }
 0x696   :  { %p3962_p12 = pnand %p3961_p11, %p3955_p8 }
 0x698   :  { %3743 = vmatmul.mubr.msk.bf16.vlgmr.msra.gmra.mrb[116].mxu0 %vm126_vm2, %v3154_v9 }
 0x699   :  { %3755 = vmatpush3.bf16.msra.mxu0 %v4109_v13  ;;  %3756 = vmatprep.mubr.msk.bf16.mxu0 %vm4008_vm0, %v4007_v0 }
 0x69a   :  { %3768 = vmatprep.subr.bf16.mxu0 %v4007_v0 }
 0x6a0   :  { %3757 = vmatmul.mubr.msk.bf16.vlgmr.msra.gmra.mrb[120].mxu0 %vm126_vm2, %v3154_v9 }
 0x6a1   :  { %3769 = vmatpush3.bf16.msra.mxu0 %v4130_v17  ;;  %3770 = vmatprep.mubr.msk.bf16.mxu0 %vm4008_vm0, %v4007_v0 }
 0x6a8   :  { %3771 = vmatmul.mubr.msk.bf16.vlgmr.msra.gmra.mrb[124].mxu0 %vm126_vm2, %v3154_v9 }
 0x745   :  { %v2347_v8 = vpop.f32.mrb[96].mxu1 }
 0x746   :  { %v2391_v57 = vadd.f32 %v2390_v21, %v2347_v8  ;;  %v3668_v58 = vpop.f32.mrb[97].mxu1 }
 0x747   :  { %v2350_v59 = vpop.f32.mrb[98].mxu1 }
 0x748   :  { %v2396_v13 = vadd.f32 %v4516_v50, %v2391_v57  ;;  %v3669_v61 = vpop.f32.mrb[99].mxu1 }
 0x74a   :  { %v3145_v62 = vmul.f32 -1.442695, %v2396_v13 }
 0x74c   :  { %3888 = vpow2.f32 %v3145_v62 }
 0x74d   :  { %v2437_v42 = vpop.f32.mrb[100].mxu1 }
 0x74e   :  { %v2478_v63 = vadd.f32 %v2477_v45, %v2437_v42  ;;  %v3682_v35 = vpop.f32.mrb[101].mxu1 }
 0x74f   :  { %v2440_v2 = vpop.f32.mrb[102].mxu1 }
 0x750   :  { %v2483_v17 = vadd.f32 %v4522_v23, %v2478_v63  ;;  %v3683_v5 = vpop.f32.mrb[103].mxu1 }
 0x752   :  { %v3148_v10 = vmul.f32 -1.442695, %v2483_v17 }
 0x754   :  { %3890 = vpow2.f32 %v3148_v10 }
 0x755   :  { %v2524_v16 = vpop.f32.mrb[104].mxu1 }
 0x756   :  { %v3889_v19 = vpop.eup %3888  ;;  %v2565_v20 = vadd.f32 %v2564_v49, %v2524_v16  ;;  %v3696_v47 = vpop.f32.mrb[105].mxu1 }
 0x757   :  { %v2400_v1 = vadd.f32 1.0, %v3889_v19  ;;  %v2527_v11 = vpop.f32.mrb[106].mxu1 }
 0x758   :  { %v2570_v14 = vadd.f32 %v4528_v7, %v2565_v20  ;;  %v3697_v60 = vpop.f32.mrb[107].mxu1 }
 0x759   :  { %3892 = vrcp.f32 %v2400_v1 }
 0x75a   :  { %3894 = vtanh.f32 %v2570_v14 }
 0x75d   :  { %v2606_v18 = vpop.f32.mrb[108].mxu1 }
 0x75e   :  { %v3891_v4 = vpop.eup %3890  ;;  %v2647_v28 = vadd.f32 %v2646_v53, %v2606_v18  ;;  %v3710_v29 = vpop.f32.mrb[109].mxu1 }
 0x75f   :  { %v2487_v30 = vadd.f32 1.0, %v3891_v4  ;;  %v2609_v31 = vpop.f32.mrb[110].mxu1 }
 0x760   :  { %v2652_v32 = vadd.f32 %v4534_v15, %v2647_v28  ;;  %v3711_v33 = vpop.f32.mrb[111].mxu1 }
 0x761   :  { %3896 = vrcp.f32 %v2487_v30 }
 0x762   :  { %v3153_v36 = vmul.f32 -1.442695, %v2652_v32 }
 0x763   :  { %v3893_v37 = vpop.eup %3892 }
 0x764   :  { %v3895_v38 = vpop.eup %3894  ;;  %3898 = vpow2.f32 %v3153_v36 }
 0x765   :  { %v2660_v39 = vmul.f32 %v3895_v38, %v3893_v37 }
 0x76b   :  { %v3897_v40 = vpop.eup %3896 }
 0x76c   :  { %v2659_v21 = vmul.f32 %v3897_v40, %v4538_v34 }
 0x76e   :  { %v3899_v41 = vpop.eup %3898  ;;  %v4593_v43 = vadd.f32 %v2660_v39, %v2659_v21 }
 0x76f   :  { %v2656_v44 = vadd.f32 1.0, %v3899_v41 }
 0x770   :  { %3900 = vtanh.f32 %v4593_v43 }
 0x771   :  { %3902 = vrcp.f32 %v2656_v44 }
 0x77a   :  { %v3901_v45 = vpop.eup %3900 }
 0x77b   :  { %v3903_v46 = vpop.eup %3902 }
 0x77c   :  { %v2663_v48 = vmul.f32 %v3903_v46, %v3901_v45 }
 0x77e   :  { %2665 = vst.msk [vmem:[#allocation5 + $0x30] sm:$0xff] %vm82_vm3, %v2663_v48  ;;  %v2668_v27 = vpack.c.bf16 %v2663_v48, %v2663_v48 }
 0x780   :  { %3723 = vmatmul.mubr.msk.bf16.vlgmr.msra.gmra.mrb[112].mxu1 %vm82_vm3, %v2668_v27 }
 0x781   :  { %3733 = vmatpush3.bf16.msra.mxu1 %v4451_v56  ;;  %3736 = vmatprep.mubr.msk.bf16.mxu1 %vm4008_vm0, %v4007_v0  ;;  %v2749_v56 = vpop.f32.mrb[112].mxu0 }
 0x782   :  { %3734 = vmatprep.subr.bf16.mxu1 %v4007_v0 }
 0x785   :  { %3735 = vmatpush3.bf16.msra.mxu1 %v4457_v12  ;;  %v3730_v12 = vpop.f32.mrb[113].mxu0 }
 0x786   :  { %3746 = vmatprep.subr.bf16.mxu1 %v4007_v0 }
 0x788   :  { %3737 = vmatmul.mubr.msk.bf16.vlgmr.msra.gmra.mrb[116].mxu1 %vm82_vm3, %v2668_v27 }
 0x789   :  { %3747 = vmatpush3.bf16.msra.mxu1 %v4462_v22  ;;  %3750 = vmatprep.mubr.msk.bf16.mxu1 %vm4008_vm0, %v4007_v0  ;;  %v2752_v22 = vpop.f32.mrb[114].mxu0 }
 0x78a   :  { %3748 = vmatprep.subr.bf16.mxu1 %v4007_v0  ;;  %v3731_v34 = vpop.f32.mrb[115].mxu0 }
 0x78d   :  { %3749 = vmatpush3.bf16.msra.mxu1 %v4468_v24  ;;  %v2836_v24 = vpop.f32.mrb[116].mxu0 }
 0x78e   :  { %3760 = vmatprep.subr.bf16.mxu1 %v4007_v0  ;;  %v3744_v49 = vpop.f32.mrb[117].mxu0 }
 0x78f   :  { %v2839_v51 = vpop.f32.mrb[118].mxu0 }
 0x790   :  { %3751 = vmatmul.mubr.msk.bf16.vlgmr.msra.gmra.mrb[120].mxu1 %vm82_vm3, %v2668_v27  ;;  %v3745_v6 = vpop.f32.mrb[119].mxu0 }
 0x791   :  { %3761 = vmatpush3.bf16.msra.mxu1 %v4473_v25  ;;  %3764 = vmatprep.mubr.msk.bf16.mxu1 %vm4008_vm0, %v4007_v0  ;;  %v2923_v52 = vpop.f32.mrb[120].mxu0 }
 0x792   :  { %3762 = vmatprep.subr.bf16.mxu1 %v4007_v0  ;;  %v3758_v53 = vpop.f32.mrb[121].mxu0 }
 0x793   :  { %v2926_v25 = vpop.f32.mrb[122].mxu0 }
 0x794   :  { %v3759_v3 = vpop.f32.mrb[123].mxu0 }
 0x795   :  { %3763 = vmatpush3.bf16.msra.mxu1 %v4479_v26  ;;  %v3005_v54 = vpop.f32.mrb[124].mxu0 }
 0x796   :  { %v3772_v55 = vpop.f32.mrb[125].mxu0 }
 0x797   :  { %v3008_v9 = vpop.f32.mrb[126].mxu0 }
 0x798   :  { %3765 = vmatmul.mubr.msk.bf16.vlgmr.msra.gmra.mrb[124].mxu1 %vm82_vm3, %v2668_v27  ;;  %v3773_v0 = vpop.f32.mrb[127].mxu0 }
 0x853   :  { %v2706_v8 = vpop.f32.mrb[112].mxu1 }
 0x854   :  { %v2750_v26 = vadd.f32 %v2749_v56, %v2706_v8  ;;  %v3724_v57 = vpop.f32.mrb[113].mxu1 }
 0x855   :  { %v2709_v58 = vpop.f32.mrb[114].mxu1 }
 0x856   :  { %v2755_v59 = vadd.f32 %v4516_v50, %v2750_v26  ;;  %v3725_v13 = vpop.f32.mrb[115].mxu1 }
 0x858   :  { %v3157_v61 = vmul.f32 -1.442695, %v2755_v59 }
 0x85a   :  { %3904 = vpow2.f32 %v3157_v61 }
 0x85b   :  { %v2796_v62 = vpop.f32.mrb[116].mxu1 }
 0x85c   :  { %v2837_v42 = vadd.f32 %v2836_v24, %v2796_v62  ;;  %v3738_v63 = vpop.f32.mrb[117].mxu1 }
 0x85d   :  { %v2799_v35 = vpop.f32.mrb[118].mxu1 }
 0x85e   :  { %v2842_v2 = vadd.f32 %v4522_v23, %v2837_v42  ;;  %v3739_v17 = vpop.f32.mrb[119].mxu1 }
 0x860   :  { %v3160_v5 = vmul.f32 -1.442695, %v2842_v2 }
 0x862   :  { %3906 = vpow2.f32 %v3160_v5 }
 0x863   :  { %v2883_v10 = vpop.f32.mrb[120].mxu1 }
 0x864   :  { %v3905_v16 = vpop.eup %3904  ;;  %v2924_v19 = vadd.f32 %v2923_v52, %v2883_v10  ;;  %v3752_v20 = vpop.f32.mrb[121].mxu1 }
 0x865   :  { %v2759_v47 = vadd.f32 1.0, %v3905_v16  ;;  %v2886_v1 = vpop.f32.mrb[122].mxu1 }
 0x866   :  { %v2929_v50 = vadd.f32 %v4528_v7, %v2924_v19  ;;  %v3753_v11 = vpop.f32.mrb[123].mxu1 }
 0x867   :  { %3908 = vrcp.f32 %v2759_v47 }
 0x868   :  { %3910 = vtanh.f32 %v2929_v50 }
 0x86b   :  { %v2965_v14 = vpop.f32.mrb[124].mxu1 }
 0x86c   :  { %v3907_v60 = vpop.eup %3906  ;;  %v3006_v18 = vadd.f32 %v3005_v54, %v2965_v14  ;;  %v3766_v4 = vpop.f32.mrb[125].mxu1 }
 0x86d   :  { %v2846_v28 = vadd.f32 1.0, %v3907_v60  ;;  %v2968_v23 = vpop.f32.mrb[126].mxu1 }
 0x86e   :  { %v3011_v29 = vadd.f32 %v4534_v15, %v3006_v18  ;;  %v3767_v30 = vpop.f32.mrb[127].mxu1 }
 0x86f   :  { %3912 = vrcp.f32 %v2846_v28 }
 0x870   :  { %v3165_v31 = vmul.f32 -1.442695, %v3011_v29 }
 0x871   :  { %v3909_v32 = vpop.eup %3908 }
 0x872   :  { %v3911_v33 = vpop.eup %3910  ;;  %3914 = vpow2.f32 %v3165_v31 }
 0x873   :  { %v3019_v36 = vmul.f32 %v3911_v33, %v3909_v32 }
 0x879   :  { %v3913_v37 = vpop.eup %3912 }
 0x87a   :  { %v3018_v7 = vmul.f32 %v3913_v37, %v4593_v43 }
 0x87c   :  { %v3915_v38 = vpop.eup %3914  ;;  %v3020_v39 = vadd.f32 %v3019_v36, %v3018_v7 }
 0x87d   :  { %v3015_v40 = vadd.f32 1.0, %v3915_v38 }
 0x87e   :  { %3916 = vtanh.f32 %v3020_v39  ;;  %3025 = vst.msk [vmem:[#allocation6] sm:$0xff] %vm82_vm3, %v3020_v39 }
 0x87f   :  { %3918 = vrcp.f32 %v3015_v40 }
 0x880   :  { %3965 = shalt.err (!%p3962_p12)
}
 0x881   :  { %s3966_s21 = scalar_lea.hbm %s4654_s5, 128 }
 0x882   :  { %p3967_p13 = scmp.ne.s32.totalorder %s4654_s5, %s3966_s21  ;;  %p3970_p0 = scmp.lt.u32.totalorder %s3966_s21, %s4654_s5 }
 0x884   :  { %p3972_p1 = pnand %p3970_p0, %p3967_p13 }
 0x886   :  { %3975 = shalt.err (!%p3972_p1)
}
 0x887   :  { %3047 = dma.vmem_to_hbm [thread:$0]  %s3045_s17, 128, %s4654_s5, [#allocation7]  }
 0x888   :  { %s4011_s28 = smov [#allocation5]   ;;  %v3917_v15 = vpop.eup %3916 }
 0x889   :  { %s3031_s29 = sshll.u32 %s4011_s28, 4  ;;  %v3919_v21 = vpop.eup %3918  ;;  %s3032_s29 = int_to_ptr.vmem [resolvable:$true] %s3031_s29 }
 0x88a   :  { %v3022_v41 = vmul.f32 %v3919_v21, %v3917_v15  ;;  %s3976_s30 = scalar_lea.vmem %s3032_s29, 1024  ;;  %p3981_p3 = scmp.lt.s32.totalorder %s3032_s29, %s3032_s29 }
 0x88b   :  { %p3977_p2 = scmp.ne.s32.totalorder %s3032_s29, %s3976_s30  ;;  %p3982_p4 = scmp.lt.s32.totalorder %s3976_s30, %s3976_s30 }
 0x88c   :  { %3024 = vst.msk [vmem:[#allocation5 + $0x38] sm:$0xff] %vm82_vm3, %v3022_v41 }
 0x88d   :  { %p3983_p5 = por %p3982_p4, %p3981_p3 }
 0x88f   :  { %p3984_p6 = pnand %p3983_p5, %p3977_p2 }
 0x891   :  { %3987 = shalt.err (!%p3984_p6)
}
 0x892   :  { %s3988_s8 = scalar_lea.hbm %s4653_s4, 1024 }
 0x893   :  { %p3989_p7 = scmp.ne.s32.totalorder %s4653_s4, %s3988_s8  ;;  %p3992_p8 = scmp.lt.u32.totalorder %s3988_s8, %s4653_s4 }
 0x895   :  { %p3994_p9 = pnand %p3992_p8, %p3989_p7 }
 0x897   :  { %3997 = shalt.err (!%p3994_p9)
}
 0x898   :  { %s4012_s11 = smov 128   ;;  %s4013_s12 = smov 8  }
 0x899   :  { %3037 = dma.vmem_to_hbm [thread:$0]  %s3032_s29, 1024, %s4653_s4, [#allocation4], %s4012_s11, %s4012_s11, %s4013_s12  }
 0x89a   :  { %4000 = dma.done.wait [#allocation4], 1024  }
 0x89b   :  { %4001 = vsyncadd [#allocation4], 4294966272 }
 0x89c   :  { %4002 = dma.done.wait [#allocation7], 128  }
 0x89d   :  { %4003 = vsyncadd [#allocation7], 4294967168 }
 0x89e   :  { %3054 = vsyncpa [#allocation3], 1 }
 0x89f   :  { %3055 = vsyncpa [#allocation4], 1 }
 0x8a0   :  { %3056 = vsyncpa [#allocation7], 1 }

</bundles_post_ra>
